<compile_context>
chip_gen: v7x
topology: tpu7x:2x2x1
jax: 0.10.0
libtpu: 0.0.40
codegen_flags: <defaults>
</compile_context>

<pallas_src>
import jax
import jax.numpy as jnp
import numpy as np
from jax.experimental import pallas as pl
from jax.experimental.pallas import tpu as pltpu

EPS = 1e-5


def add_conv1x1_bn_kernel(x1_ref, x2_ref, w_ref, gamma_ref, beta_ref, o_ref, acc_ref):
    # x1_ref, x2_ref: (Cin, M)  f32  -- same block every grid step (fetched once)
    # w_ref:          (TC, Cin) f32  -- tile of output channels
    # gamma_ref:      (TC, 1)   f32
    # beta_ref:       (TC, 1)   f32
    # o_ref:          (TC, M)   bf16
    # acc_ref:        (TC, M)   f32 VMEM scratch (MXU landing buffer)

    # Elementwise add in f32 on the VPU, single cast to bf16 for the MXU.
    xs = (x1_ref[...] + x2_ref[...]).astype(jnp.bfloat16)          # (Cin, M)
    w_bf = w_ref[...].astype(jnp.bfloat16)                         # (TC, Cin)

    # 1x1 conv of (x1 + x2) == W @ (x1 + x2); f32 accumulation lands in VMEM.
    acc_ref[...] = jnp.dot(w_bf, xs, preferred_element_type=jnp.float32)
    y = acc_ref[...]                                               # (TC, M) f32

    # Training-mode BatchNorm statistics over M = N*H*W (the lane axis).
    # Two-pass form: numerically safe when |mean| >> std (no E[y^2]-mean^2
    # cancellation); costs the same number of VMEM passes over y.
    inv_m = 1.0 / y.shape[1]
    mean = jnp.sum(y, axis=1, keepdims=True) * inv_m               # (TC, 1)
    d = y - mean
    var = jnp.sum(d * d, axis=1, keepdims=True) * inv_m            # biased var
    inv_std = jax.lax.rsqrt(var + EPS)                             # EUP (free slot)

    # Fold gamma / inv_std / mean / beta into a single per-channel FMA.
    scale = gamma_ref[...] * inv_std                               # (TC, 1)
    shift = beta_ref[...] - mean * scale                           # (TC, 1)
    o_ref[...] = (y * scale + shift).astype(o_ref.dtype)


def fused_add_conv_bn(x186, x172, conv_w, gamma, beta, *,
                      block_cout=96, out_dtype=jnp.bfloat16):
    """x186, x172: [N, Cin, H, W]; conv_w: [Cout, Cin, 1, 1]; gamma/beta: [Cout].

    Returns [N, Cout, H, W] in `out_dtype` (bf16 by default: explicit contract,
    the BN output is consumed as a bf16 activation downstream).
    """
    N, Cin, H, W = x186.shape
    Cout = conv_w.shape[0]
    M = N * H * W

    def to_cm(x):
        # NCHW -> [Cin, N*H*W]; for N == 1 this is a pure reshape (no copy).
        if N == 1:
            return x.reshape(Cin, M)
        return jnp.transpose(x, (1, 0, 2, 3)).reshape(Cin, M)

    x1 = to_cm(x186)                                  # [Cin, M] (input dtype, f32)
    x2 = to_cm(x172)                                  # [Cin, M]
    w = conv_w.reshape(Cout, Cin)                     # [Cout, Cin] (pure reshape)
    g = gamma.reshape(Cout, 1).astype(jnp.float32)
    bt = beta.reshape(Cout, 1).astype(jnp.float32)

    block_cout = min(block_cout, Cout)
    # Multiple of 16 keeps bf16 output tiles (16,128)-aligned; must divide Cout.
    assert Cout % block_cout == 0 and block_cout % 16 == 0
    grid = (Cout // block_cout,)

    in_bytes = np.dtype(x1.dtype).itemsize
    out_bytes = np.dtype(out_dtype).itemsize
    cost = pl.CostEstimate(
        flops=2 * M * Cin * Cout + M * Cin + 8 * M * Cout,   # matmul + add + BN
        transcendentals=Cout,                                # rsqrt per channel
        bytes_accessed=(2 * Cin * M * in_bytes              # x1, x2
                        + Cout * Cin * in_bytes              # weight
                        + 2 * Cout * 4                       # gamma, beta
                        + Cout * M * out_bytes),             # output
    )

    out_cm = pl.pallas_call(
        add_conv1x1_bn_kernel,
        out_shape=jax.ShapeDtypeStruct((Cout, M), out_dtype),
        grid=grid,
        in_specs=[
            pl.BlockSpec((Cin, M), lambda i: (0, 0)),          # x1: constant block
            pl.BlockSpec((Cin, M), lambda i: (0, 0)),          # x2: constant block
            pl.BlockSpec((block_cout, Cin), lambda i: (i, 0)),  # weight tile
            pl.BlockSpec((block_cout, 1), lambda i: (i, 0)),    # gamma tile
            pl.BlockSpec((block_cout, 1), lambda i: (i, 0)),    # beta tile
        ],
        out_specs=pl.BlockSpec((block_cout, M), lambda i: (i, 0)),
        scratch_shapes=[pltpu.VMEM((block_cout, M), jnp.float32)],
        compiler_params=pltpu.CompilerParams(
            dimension_semantics=("parallel",),                 # megacore on v7x
        ),
        cost_estimate=cost,
    )(x1, x2, w, g, bt)

    # [Cout, M] -> NCHW (for N == 1 a pure reshape).
    if N == 1:
        return out_cm.reshape(1, Cout, H, W)
    return jnp.transpose(out_cm.reshape(Cout, N, H, W), (1, 0, 2, 3))


def reference(x186, x172, conv_w, gamma, beta):
    # Same op sequence as the PyTorch module (add -> 1x1 conv -> training-mode
    # BN).  Matches the kernel's explicit precision contract: add in f32, conv
    # inputs/weights rounded to bf16, all accumulation / BN math in f32.
    x = (x186 + x172).astype(jnp.bfloat16).astype(jnp.float32)
    w = conv_w.astype(jnp.bfloat16).astype(jnp.float32)
    y = jax.lax.conv_general_dilated(
        x, w, window_strides=(1, 1), padding="VALID",
        dimension_numbers=("NCHW", "OIHW", "NCHW"),
        precision=jax.lax.Precision.HIGHEST)
    mean = jnp.mean(y, axis=(0, 2, 3), keepdims=True)
    var = jnp.var(y, axis=(0, 2, 3), keepdims=True)
    return (y - mean) * jax.lax.rsqrt(var + EPS) * gamma.reshape(1, -1, 1, 1) \
        + beta.reshape(1, -1, 1, 1)


if __name__ == "__main__":
    key = jax.random.PRNGKey(0)
    k1, k2, k3 = jax.random.split(key, 3)

    N, Cin, H, W = 1, 80, 28, 28
    Cout = 480

    x186 = jax.random.normal(k1, (N, Cin, H, W), dtype=jnp.float32)
    x172 = jax.random.normal(k2, (N, Cin, H, W), dtype=jnp.float32)
    # Conv2d(80, 480, 1, bias=False) weight, deterministic init (kaiming-like scale)
    conv_w = jax.random.normal(k3, (Cout, Cin, 1, 1), dtype=jnp.float32) * (1.0 / Cin) ** 0.5
    # BatchNorm2d(480) default init: gamma=1, beta=0
    gamma = jnp.ones((Cout,), dtype=jnp.float32)
    beta = jnp.zeros((Cout,), dtype=jnp.float32)

    fused = jax.jit(fused_add_conv_bn)
    out = jax.block_until_ready(fused(x186, x172, conv_w, gamma, beta))
    ref = jax.block_until_ready(reference(x186, x172, conv_w, gamma, beta))

    assert out.shape == (N, Cout, H, W)
    assert out.dtype == jnp.bfloat16
    out_f32 = out.astype(jnp.float32)
    err = jnp.max(jnp.abs(out_f32 - ref))
    # bf16 output rounding (~0.4% relative) on ~N(0,1) BN outputs -> 3e-2 tol.
    assert jnp.allclose(out_f32, ref, atol=3e-2, rtol=3e-2), f"max abs err {err}"

    print("KERNEL_OK")
</pallas_src>

<mosaic_0001>
module attributes {stable_mosaic.version = 11 : i64} {
  func.func @add_conv1x1_bn_kernel(%arg0: i32, %arg1: memref<80x784xf32, #tpu.memory_space<vmem>>, %arg2: memref<80x784xf32, #tpu.memory_space<vmem>>, %arg3: memref<96x80xf32, #tpu.memory_space<vmem>>, %arg4: memref<96x1xf32, #tpu.memory_space<vmem>>, %arg5: memref<96x1xf32, #tpu.memory_space<vmem>>, %arg6: memref<96x784xbf16, #tpu.memory_space<vmem>>, %arg7: memref<96x784xf32, #tpu.memory_space<vmem>>) attributes {dimension_semantics = [#tpu.dimension_semantics<parallel>], iteration_bounds = array<i64: 5>, scalar_prefetch = 0 : i64, scratch_operands = 1 : i64, tpu.core_type = #tpu.core_type<tc>, window_params = [{pipeline_mode = #tpu.pipeline_mode<synchronous>, transform_indices = @transform_0, window_bounds = array<i64: 80, 784>}, {pipeline_mode = #tpu.pipeline_mode<synchronous>, transform_indices = @transform_1, window_bounds = array<i64: 80, 784>}, {transform_indices = @transform_2, window_bounds = array<i64: 96, 80>}, {transform_indices = @transform_3, window_bounds = array<i64: 96, 1>}, {transform_indices = @transform_4, window_bounds = array<i64: 96, 1>}, {transform_indices = @transform_5, window_bounds = array<i64: 96, 784>}]} {
    %c0 = arith.constant 0 : index
    %c0_0 = arith.constant 0 : index
    %0 = vector.load %arg1[%c0, %c0_0] : memref<80x784xf32, #tpu.memory_space<vmem>>, vector<80x784xf32>
    %c0_1 = arith.constant 0 : index
    %c0_2 = arith.constant 0 : index
    %1 = vector.load %arg2[%c0_1, %c0_2] : memref<80x784xf32, #tpu.memory_space<vmem>>, vector<80x784xf32>
    %2 = arith.addf %0, %1 : vector<80x784xf32>
    %3 = arith.truncf %2 : vector<80x784xf32> to vector<80x784xbf16>
    %c0_3 = arith.constant 0 : index
    %c0_4 = arith.constant 0 : index
    %4 = vector.load %arg3[%c0_3, %c0_4] : memref<96x80xf32, #tpu.memory_space<vmem>>, vector<96x80xf32>
    %5 = arith.truncf %4 : vector<96x80xf32> to vector<96x80xbf16>
    %cst = arith.constant dense<0.000000e+00> : vector<96x784xf32>
    %6 = tpu.matmul %5, %3, %cst {dimension_numbers = #tpu.dot_dimension_numbers<[1], [0], [0], [1], [0, 0, 1, 1], [], []>} : vector<96x80xbf16>, vector<80x784xbf16>, vector<96x784xf32> -> vector<96x784xf32>
    %c0_5 = arith.constant 0 : index
    %c0_6 = arith.constant 0 : index
    %7 = vector.load %arg7[%c0_5, %c0_6] : memref<96x784xf32, #tpu.memory_space<vmem>>, vector<96x784xf32>
    tpu.vector_store %arg7[%c0_5, %c0_6], %6 {strides = array<i32>} : memref<96x784xf32, #tpu.memory_space<vmem>>, vector<96x784xf32>,
    %c0_7 = arith.constant 0 : index
    %c0_8 = arith.constant 0 : index
    %8 = vector.load %arg7[%c0_7, %c0_8] : memref<96x784xf32, #tpu.memory_space<vmem>>, vector<96x784xf32>
    %cst_9 = arith.constant dense<0.000000e+00> : vector<96xf32>
    %9 = vector.multi_reduction <add>, %8, %cst_9 [1] : vector<96x784xf32> to vector<96xf32>
    %10 = vector.shape_cast %9 : vector<96xf32> to vector<96x1xf32>
    %cst_10 = arith.constant 0.00127551018 : f32
    %11 = vector.broadcast %cst_10 : f32 to vector<96x1xf32>
    %12 = arith.mulf %10, %11 : vector<96x1xf32>
    %13 = vector.broadcast %12 : vector<96x1xf32> to vector<96x784xf32>
    %14 = arith.subf %8, %13 : vector<96x784xf32>
    %15 = arith.mulf %14, %14 : vector<96x784xf32>
    %cst_11 = arith.constant dense<0.000000e+00> : vector<96xf32>
    %16 = vector.multi_reduction <add>, %15, %cst_11 [1] : vector<96x784xf32> to vector<96xf32>
    %17 = vector.shape_cast %16 : vector<96xf32> to vector<96x1xf32>
    %cst_12 = arith.constant 0.00127551018 : f32
    %18 = vector.broadcast %cst_12 : f32 to vector<96x1xf32>
    %19 = arith.mulf %17, %18 : vector<96x1xf32>
    %cst_13 = arith.constant 9.99999974E-6 : f32
    %20 = vector.broadcast %cst_13 : f32 to vector<96x1xf32>
    %21 = arith.addf %19, %20 : vector<96x1xf32>
    %22 = math.rsqrt %21 : vector<96x1xf32>
    %c0_14 = arith.constant 0 : index
    %c0_15 = arith.constant 0 : index
    %23 = vector.load %arg4[%c0_14, %c0_15] : memref<96x1xf32, #tpu.memory_space<vmem>>, vector<96x1xf32>
    %24 = arith.mulf %23, %22 : vector<96x1xf32>
    %c0_16 = arith.constant 0 : index
    %c0_17 = arith.constant 0 : index
    %25 = vector.load %arg5[%c0_16, %c0_17] : memref<96x1xf32, #tpu.memory_space<vmem>>, vector<96x1xf32>
    %26 = arith.mulf %12, %24 : vector<96x1xf32>
    %27 = arith.subf %25, %26 : vector<96x1xf32>
    %28 = vector.broadcast %24 : vector<96x1xf32> to vector<96x784xf32>
    %29 = arith.mulf %8, %28 : vector<96x784xf32>
    %30 = vector.broadcast %27 : vector<96x1xf32> to vector<96x784xf32>
    %31 = arith.addf %29, %30 : vector<96x784xf32>
    %32 = arith.truncf %31 : vector<96x784xf32> to vector<96x784xbf16>
    %c0_18 = arith.constant 0 : index
    %c0_19 = arith.constant 0 : index
    %33 = vector.load %arg6[%c0_18, %c0_19] : memref<96x784xbf16, #tpu.memory_space<vmem>>, vector<96x784xbf16>
    tpu.vector_store %arg6[%c0_18, %c0_19], %32 {strides = array<i32>} : memref<96x784xbf16, #tpu.memory_space<vmem>>, vector<96x784xbf16>,
    return
  }
  func.func @transform_0(%arg0: i32) -> (i32, i32) {
    %c0_i32 = arith.constant 0 : i32
    %c0_i32_0 = arith.constant 0 : i32
    %c0_i32_1 = arith.constant 0 : i32
    return %c0_i32, %c0_i32_0 : i32, i32
  }
  func.func @transform_1(%arg0: i32) -> (i32, i32) {
    %c0_i32 = arith.constant 0 : i32
    %c0_i32_0 = arith.constant 0 : i32
    %c0_i32_1 = arith.constant 0 : i32
    return %c0_i32, %c0_i32_0 : i32, i32
  }
  func.func @transform_2(%arg0: i32) -> (i32, i32) {
    %c0_i32 = arith.constant 0 : i32
    %c0_i32_0 = arith.constant 0 : i32
    return %arg0, %c0_i32 : i32, i32
  }
  func.func @transform_3(%arg0: i32) -> (i32, i32) {
    %c0_i32 = arith.constant 0 : i32
    %c0_i32_0 = arith.constant 0 : i32
    return %arg0, %c0_i32 : i32, i32
  }
  func.func @transform_4(%arg0: i32) -> (i32, i32) {
    %c0_i32 = arith.constant 0 : i32
    %c0_i32_0 = arith.constant 0 : i32
    return %arg0, %c0_i32 : i32, i32
  }
  func.func @transform_5(%arg0: i32) -> (i32, i32) {
    %c0_i32 = arith.constant 0 : i32
    %c0_i32_0 = arith.constant 0 : i32
    return %arg0, %c0_i32 : i32, i32
  }
}

</mosaic_0001>

<bundles_post_ra>
// kernel: fused_add_conv_bn.1
= control target key start
LH: loop header
LB: loop body
LE: loop exit
PB: predicated region body
PF: predicated region fallthrough
CT: control target
= control target key end

     0   :  { %s2584_s18 = smov 0   ;;  %s3812_s0 = inlined_call_operand.vmem [shape: f32[80,784], index: 0, kind: input, shape index: {}]   ;;  %s3813_s1 = inlined_call_operand.vmem [shape: f32[80,784], index: 1, kind: input, shape index: {}]   ;;  %s3814_s2 = inlined_call_operand.vmem [shape: f32[480,80], index: 2, kind: input, shape index: {}]   ;;  %s3815_s3 = inlined_call_operand.vmem [shape: f32[480,1], index: 3, kind: input, shape index: {}]   ;;  %s3816_s4 = inlined_call_operand.vmem [shape: f32[480,1], index: 4, kind: input, shape index: {}]   ;;  %s3817_s5 = inlined_call_operand.vmem [shape: bf16[480,784], index: 5, kind: output, shape index: {}]  }
   0x1 LB: > { %s2261_s19 = sadd.s32 4294967295, %s2551_s18   ;;  %p2265_p0 = scmp.ge.s32.totalorder %s2551_s18, 1  ;;  %s2551_s18 = sphi %s2584_s18, %s15_s18  }
   0x2   : > { %p210_p1 = scmp.lt.s32.totalorder %s2551_s18, 6 }
   0x4   : > { %p211_p2 = pnand %p2265_p0, %p210_p1 }
   0x6   : > { %214 = sbr.rel (%p211_p2) target bundleno = 838 (0x346), region = 40 }
   0xd   : > { %v276_v0 = vld [vmem:[%s3812_s0 + $0x8] sm:$0xff]  ;;  %v283_v1 = vld [vmem:[%s3812_s0 + $0x40] sm:$0xff]  ;;  %v278_v5 = vld [vmem:[%s3812_s0 + $0x18] sm:$0xff]  ;;  %v2553_v7 = vmov 0   ;;  %s2679_s28 = smul.u32 12, %s2261_s19  ;;  %vm538_vm0 = vcmask 654336  }
   0xe   : > { %v346_v2 = vld [vmem:[%s3813_s1 + $0x8] sm:$0xff]  ;;  %v353_v3 = vld [vmem:[%s3813_s1 + $0x40] sm:$0xff]  ;;  %v285_v6 = vld [vmem:[%s3812_s0 + $0x50] sm:$0xff]  ;;  %589 = vmatprep.mubr.bf16.mxu0 %v2553_v7  ;;  %682 = vmatprep.mubr.bf16.mxu1 %v2553_v7  ;;  %vm923_vm1 = vcmask 130048   ;;  %vm2133_vm2 = vcmask 125952  }
   0xf   : > { %v416_v4 = vadd.f32 %v346_v2, %v276_v0  ;;  %v423_v8 = vadd.f32 %v353_v3, %v283_v1  ;;  %v348_v9 = vld [vmem:[%s3813_s1 + $0x18] sm:$0xff]  ;;  %v355_v10 = vld [vmem:[%s3813_s1 + $0x50] sm:$0xff]  ;;  %v275_v11 = vld [vmem:[%s3812_s0] sm:$0xff]  ;;  %2435 = vset.pattern.permute.xlu0 %v2553_v7  ;;  %2436 = vset.pattern.permute.xlu1 %v2553_v7  ;;  %p250_p3 = scmp.lt.s32.totalorder %s2679_s28, 59 }
  0x10   : > { %v418_v12 = vadd.f32 %v348_v9, %v278_v5  ;;  %v425_v13 = vadd.f32 %v355_v10, %v285_v6  ;;  %v282_v14 = vld [vmem:[%s3812_s0 + $0x38] sm:$0xff]  ;;  %v345_v15 = vld [vmem:[%s3813_s1] sm:$0xff]  ;;  %v277_v20 = vld [vmem:[%s3812_s0 + $0x10] sm:$0xff] }
  0x11   : > { %v352_v16 = vld [vmem:[%s3813_s1 + $0x38] sm:$0xff]  ;;  %v486_v17 = vpack.c.bf16 %v423_v8, %v416_v4  ;;  %v415_v18 = vadd.f32 %v345_v15, %v275_v11  ;;  %v284_v21 = vld [vmem:[%s3812_s0 + $0x48] sm:$0xff]  ;;  %v347_v22 = vld [vmem:[%s3813_s1 + $0x10] sm:$0xff]  ;;  %s3924_s28 = smov (!%p250_p3, %s2679_s28), 59 }
  0x12   : > { %v422_v19 = vadd.f32 %v352_v16, %v282_v14  ;;  %v488_v23 = vpack.c.bf16 %v425_v13, %v418_v12  ;;  %v354_v24 = vld [vmem:[%s3813_s1 + $0x48] sm:$0xff]  ;;  %v417_v25 = vadd.f32 %v347_v22, %v277_v20  ;;  %v290_v26 = vld [vmem:[%s3812_s0 + $0x78] sm:$0xff]  ;;  %v297_v27 = vld [vmem:[%s3812_s0 + $0xb0] sm:$0xff]  ;;  %s2796_s7 = sshll.u32 %s3924_s28, 3 }
  0x13   : > { %557 = vmatprep.subr.bf16.mxu0 %v486_v17  ;;  %v424_v29 = vadd.f32 %v354_v24, %v284_v21  ;;  %v360_v30 = vld [vmem:[%s3813_s1 + $0x78] sm:$0xff]  ;;  %v367_v31 = vld [vmem:[%s3813_s1 + $0xb0] sm:$0xff]  ;;  %v292_v32 = vld [vmem:[%s3812_s0 + $0x88] sm:$0xff]  ;;  %s2829_s30 = scalar_lea.vmem %s3814_s2, %s2796_s7  ;;  %s3697_s17 = scalar_lea.vmem %s3815_s3, %s2796_s7 }
  0x14   : > { %v485_v28 = vpack.c.bf16 %v422_v19, %v415_v18  ;;  %650 = vmatprep.subr.bf16.mxu1 %v488_v23  ;;  %v430_v33 = vadd.f32 %v360_v30, %v290_v26  ;;  %v437_v34 = vadd.f32 %v367_v31, %v297_v27  ;;  %v299_v35 = vld [vmem:[%s3812_s0 + $0xc0] sm:$0xff]  ;;  %v362_v36 = vld [vmem:[%s3813_s1 + $0x88] sm:$0xff]  ;;  %v289_v41 = vld [vmem:[%s3812_s0 + $0x70] sm:$0xff]  ;;  %s3705_s22 = scalar_lea.vmem %s3816_s4, %s2796_s7  ;;  %s2425_s7 = smul.u32 28, %s3924_s28 }
  0x15   : > { %v369_v37 = vld [vmem:[%s3813_s1 + $0xc0] sm:$0xff]  ;;  %v487_v38 = vpack.c.bf16 %v424_v29, %v417_v25  ;;  %v432_v39 = vadd.f32 %v362_v36, %v292_v32  ;;  %v296_v42 = vld [vmem:[%s3812_s0 + $0xa8] sm:$0xff]  ;;  %v359_v43 = vld [vmem:[%s3813_s1 + $0x70] sm:$0xff] }
  0x16   : > { %558 = vmatpush1.bf16.msra.mxu0 %v485_v28  ;;  %v439_v40 = vadd.f32 %v369_v37, %v299_v35  ;;  %v493_v44 = vpack.c.bf16 %v437_v34, %v430_v33  ;;  %v366_v45 = vld [vmem:[%s3813_s1 + $0xa8] sm:$0xff]  ;;  %v429_v46 = vadd.f32 %v359_v43, %v289_v41  ;;  %v291_v47 = vld [vmem:[%s3812_s0 + $0x80] sm:$0xff]  ;;  %v298_v48 = vld [vmem:[%s3812_s0 + $0xb8] sm:$0xff]  ;;  %s3747_s25 = scalar_lea.vmem %s3817_s5, %s2425_s7 }
  0x17   : > { %651 = vmatpush1.bf16.msra.mxu1 %v487_v38  ;;  %v436_v50 = vadd.f32 %v366_v45, %v296_v42  ;;  %v361_v51 = vld [vmem:[%s3813_s1 + $0x80] sm:$0xff]  ;;  %v368_v52 = vld [vmem:[%s3813_s1 + $0xb8] sm:$0xff]  ;;  %v304_v53 = vld [vmem:[%s3812_s0 + $0xe8] sm:$0xff] }
  0x18   : > { %v495_v49 = vpack.c.bf16 %v439_v40, %v432_v39  ;;  %559 = vmatprep.subr.bf16.mxu0 %v493_v44  ;;  %v431_v54 = vadd.f32 %v361_v51, %v291_v47  ;;  %v438_v55 = vadd.f32 %v368_v52, %v298_v48  ;;  %v311_v56 = vld [vmem:[%s3812_s0 + $0x120] sm:$0xff]  ;;  %v374_v57 = vld [vmem:[%s3813_s1 + $0xe8] sm:$0xff]  ;;  %v306_v62 = vld [vmem:[%s3812_s0 + $0xf8] sm:$0xff] }
  0x19   : > { %v381_v58 = vld [vmem:[%s3813_s1 + $0x120] sm:$0xff]  ;;  %v492_v59 = vpack.c.bf16 %v436_v50, %v429_v46  ;;  %v444_v60 = vadd.f32 %v374_v57, %v304_v53  ;;  %v313_v63 = vld [vmem:[%s3812_s0 + $0x130] sm:$0xff]  ;;  %v376_v0 = vld [vmem:[%s3813_s1 + $0xf8] sm:$0xff] }
  0x1a   : > { %652 = vmatprep.subr.bf16.mxu1 %v495_v49  ;;  %v451_v61 = vadd.f32 %v381_v58, %v311_v56  ;;  %v494_v1 = vpack.c.bf16 %v438_v55, %v431_v54  ;;  %v383_v2 = vld [vmem:[%s3813_s1 + $0x130] sm:$0xff]  ;;  %v446_v3 = vadd.f32 %v376_v0, %v306_v62  ;;  %v303_v4 = vld [vmem:[%s3812_s0 + $0xe0] sm:$0xff]  ;;  %v310_v5 = vld [vmem:[%s3812_s0 + $0x118] sm:$0xff] }
  0x1b   : > { %560 = vmatpush1.bf16.msra.mxu0 %v492_v59  ;;  %v453_v8 = vadd.f32 %v383_v2, %v313_v63  ;;  %v373_v9 = vld [vmem:[%s3813_s1 + $0xe0] sm:$0xff]  ;;  %v380_v10 = vld [vmem:[%s3813_s1 + $0x118] sm:$0xff]  ;;  %v305_v11 = vld [vmem:[%s3812_s0 + $0xf0] sm:$0xff] }
  0x1c   : > { %v500_v6 = vpack.c.bf16 %v451_v61, %v444_v60  ;;  %653 = vmatpush1.bf16.msra.mxu1 %v494_v1  ;;  %v443_v12 = vadd.f32 %v373_v9, %v303_v4  ;;  %v450_v13 = vadd.f32 %v380_v10, %v310_v5  ;;  %v312_v14 = vld [vmem:[%s3812_s0 + $0x128] sm:$0xff]  ;;  %v375_v15 = vld [vmem:[%s3813_s1 + $0xf0] sm:$0xff]  ;;  %v318_v20 = vld [vmem:[%s3812_s0 + $0x158] sm:$0xff] }
  0x1d   : > { %v382_v16 = vld [vmem:[%s3813_s1 + $0x128] sm:$0xff]  ;;  %v502_v17 = vpack.c.bf16 %v453_v8, %v446_v3  ;;  %v445_v18 = vadd.f32 %v375_v15, %v305_v11  ;;  %v325_v21 = vld [vmem:[%s3812_s0 + $0x190] sm:$0xff]  ;;  %v388_v22 = vld [vmem:[%s3813_s1 + $0x158] sm:$0xff] }
  0x1e   : > { %561 = vmatprep.subr.bf16.mxu0 %v500_v6  ;;  %v452_v19 = vadd.f32 %v382_v16, %v312_v14  ;;  %v499_v23 = vpack.c.bf16 %v450_v13, %v443_v12  ;;  %v395_v24 = vld [vmem:[%s3813_s1 + $0x190] sm:$0xff]  ;;  %v458_v25 = vadd.f32 %v388_v22, %v318_v20  ;;  %v320_v26 = vld [vmem:[%s3812_s0 + $0x168] sm:$0xff]  ;;  %v327_v27 = vld [vmem:[%s3812_s0 + $0x1a0] sm:$0xff] }
  0x1f   : > { %654 = vmatprep.subr.bf16.mxu1 %v502_v17  ;;  %v465_v29 = vadd.f32 %v395_v24, %v325_v21  ;;  %v390_v30 = vld [vmem:[%s3813_s1 + $0x168] sm:$0xff]  ;;  %v397_v31 = vld [vmem:[%s3813_s1 + $0x1a0] sm:$0xff]  ;;  %v317_v32 = vld [vmem:[%s3812_s0 + $0x150] sm:$0xff] }
  0x20   : > { %v501_v28 = vpack.c.bf16 %v452_v19, %v445_v18  ;;  %562 = vmatpush1.bf16.msra.mxu0 %v499_v23  ;;  %v460_v33 = vadd.f32 %v390_v30, %v320_v26  ;;  %v467_v34 = vadd.f32 %v397_v31, %v327_v27  ;;  %v324_v35 = vld [vmem:[%s3812_s0 + $0x188] sm:$0xff]  ;;  %v387_v36 = vld [vmem:[%s3813_s1 + $0x150] sm:$0xff]  ;;  %v319_v41 = vld [vmem:[%s3812_s0 + $0x160] sm:$0xff] }
  0x21   : > { %v394_v37 = vld [vmem:[%s3813_s1 + $0x188] sm:$0xff]  ;;  %v507_v38 = vpack.c.bf16 %v465_v29, %v458_v25  ;;  %v457_v39 = vadd.f32 %v387_v36, %v317_v32  ;;  %v326_v42 = vld [vmem:[%s3812_s0 + $0x198] sm:$0xff]  ;;  %v389_v43 = vld [vmem:[%s3813_s1 + $0x160] sm:$0xff] }
  0x22   : > { %655 = vmatpush1.bf16.msra.mxu1 %v501_v28  ;;  %v464_v40 = vadd.f32 %v394_v37, %v324_v35  ;;  %v509_v44 = vpack.c.bf16 %v467_v34, %v460_v33  ;;  %v396_v45 = vld [vmem:[%s3813_s1 + $0x198] sm:$0xff]  ;;  %v459_v46 = vadd.f32 %v389_v43, %v319_v41  ;;  %v332_v47 = vld [vmem:[%s3812_s0 + $0x1c8] sm:$0xff]  ;;  %v339_v48 = vld [vmem:[%s3812_s0 + $0x200] sm:$0xff] }
  0x23   : > { %563 = vmatprep.subr.bf16.mxu0 %v507_v38  ;;  %v466_v50 = vadd.f32 %v396_v45, %v326_v42  ;;  %v402_v51 = vld [vmem:[%s3813_s1 + $0x1c8] sm:$0xff]  ;;  %v409_v52 = vld [vmem:[%s3813_s1 + $0x200] sm:$0xff]  ;;  %v334_v53 = vld [vmem:[%s3812_s0 + $0x1d8] sm:$0xff] }
  0x24   : > { %v506_v49 = vpack.c.bf16 %v464_v40, %v457_v39  ;;  %656 = vmatprep.subr.bf16.mxu1 %v509_v44  ;;  %v472_v54 = vadd.f32 %v402_v51, %v332_v47  ;;  %v479_v55 = vadd.f32 %v409_v52, %v339_v48  ;;  %v341_v56 = vld [vmem:[%s3812_s0 + $0x210] sm:$0xff]  ;;  %v404_v57 = vld [vmem:[%s3813_s1 + $0x1d8] sm:$0xff]  ;;  %v331_v62 = vld [vmem:[%s3812_s0 + $0x1c0] sm:$0xff] }
  0x25   : > { %v411_v58 = vld [vmem:[%s3813_s1 + $0x210] sm:$0xff]  ;;  %v508_v59 = vpack.c.bf16 %v466_v50, %v459_v46  ;;  %v474_v60 = vadd.f32 %v404_v57, %v334_v53  ;;  %v338_v63 = vld [vmem:[%s3812_s0 + $0x1f8] sm:$0xff]  ;;  %v401_v0 = vld [vmem:[%s3813_s1 + $0x1c0] sm:$0xff] }
  0x26   : > { %564 = vmatpush1.bf16.msra.mxu0 %v506_v49  ;;  %v481_v61 = vadd.f32 %v411_v58, %v341_v56  ;;  %v514_v1 = vpack.c.bf16 %v479_v55, %v472_v54  ;;  %v408_v2 = vld [vmem:[%s3813_s1 + $0x1f8] sm:$0xff]  ;;  %v471_v3 = vadd.f32 %v401_v0, %v331_v62  ;;  %v333_v4 = vld [vmem:[%s3812_s0 + $0x1d0] sm:$0xff]  ;;  %v340_v5 = vld [vmem:[%s3812_s0 + $0x208] sm:$0xff] }
  0x27   : > { %657 = vmatpush1.bf16.msra.mxu1 %v508_v59  ;;  %v478_v8 = vadd.f32 %v408_v2, %v338_v63  ;;  %v403_v9 = vld [vmem:[%s3813_s1 + $0x1d0] sm:$0xff]  ;;  %v410_v10 = vld [vmem:[%s3813_s1 + $0x208] sm:$0xff]  ;;  %v520_v11 = vld [vmem:[%s2829_s30] sm:$0xff] }
  0x28   : > { %v516_v6 = vpack.c.bf16 %v481_v61, %v474_v60  ;;  %565 = vmatprep.subr.bf16.mxu0 %v514_v1  ;;  %v473_v12 = vadd.f32 %v403_v9, %v333_v4  ;;  %v480_v13 = vadd.f32 %v410_v10, %v340_v5  ;;  %v521_v14 = vld [vmem:[%s2829_s30 + $0x8] sm:$0xff]  ;;  %v287_v16 = vld [vmem:[%s3812_s0 + $0x60] sm:$0xff]  ;;  %v286_v25 = vld [vmem:[%s3812_s0 + $0x58] sm:$0xff] }
  0x29   : > { %v280_v15 = vld [vmem:[%s3812_s0 + $0x28] sm:$0xff]  ;;  %v513_v17 = vpack.c.bf16 %v478_v8, %v471_v3  ;;  %v357_v19 = vld [vmem:[%s3813_s1 + $0x60] sm:$0xff]  ;;  %v2872_v22 = vpack.c.bf16 %v521_v14, %v520_v11  ;;  %v356_v27 = vld [vmem:[%s3813_s1 + $0x58] sm:$0xff] }
  0x2a   : > { %658 = vmatprep.subr.bf16.mxu1 %v516_v6  ;;  %v350_v18 = vld [vmem:[%s3813_s1 + $0x28] sm:$0xff]  ;;  %v279_v20 = vld [vmem:[%s3812_s0 + $0x20] sm:$0xff]  ;;  %v515_v21 = vpack.c.bf16 %v480_v13, %v473_v12  ;;  %v427_v24 = vadd.f32 %v357_v19, %v287_v16  ;;  %v426_v29 = vadd.f32 %v356_v27, %v286_v25  ;;  %v281_v30 = vld [vmem:[%s3812_s0 + $0x30] sm:$0xff] }
  0x2b   : > { %v420_v23 = vadd.f32 %v350_v18, %v280_v15  ;;  %v349_v26 = vld [vmem:[%s3813_s1 + $0x20] sm:$0xff]  ;;  %566 = vmatpush1.bf16.msra.mxu0 %v513_v17  ;;  %v288_v31 = vld [vmem:[%s3812_s0 + $0x68] sm:$0xff]  ;;  %v351_v32 = vld [vmem:[%s3813_s1 + $0x30] sm:$0xff] }
  0x2c   : > { %v419_v28 = vadd.f32 %v349_v26, %v279_v20  ;;  %659 = vmatpush1.bf16.msra.mxu1 %v515_v21  ;;  %v358_v34 = vld [vmem:[%s3813_s1 + $0x68] sm:$0xff]  ;;  %v421_v35 = vadd.f32 %v351_v32, %v281_v30  ;;  %v522_v38 = vld [vmem:[%s2829_s30 + $0x10] sm:$0xff]  ;;  %v523_v39 = vld [vmem:[%s2829_s30 + $0x18] sm:$0xff] }
  0x2d   : > { %v490_v33 = vpack.c.bf16 %v427_v24, %v420_v23  ;;  %v428_v37 = vadd.f32 %v358_v34, %v288_v31  ;;  %v294_v40 = vld [vmem:[%s3812_s0 + $0x98] sm:$0xff]  ;;  %v301_v41 = vld [vmem:[%s3812_s0 + $0xd0] sm:$0xff]  ;;  %v300_v46 = vld [vmem:[%s3812_s0 + $0xc8] sm:$0xff]  ;;  %v2942_v61 = vpack.c.bf16 %v523_v39, %v522_v38 }
  0x2e   : > { %v489_v36 = vpack.c.bf16 %v426_v29, %v419_v28  ;;  %v364_v42 = vld [vmem:[%s3813_s1 + $0x98] sm:$0xff]  ;;  %2270 = vmatmul.mubr.msk.bf16.vlgmr.msra.gmra.mrb[0].mxu0 %vm538_vm0, %v2872_v22  ;;  %v371_v43 = vld [vmem:[%s3813_s1 + $0xd0] sm:$0xff]  ;;  %v370_v50 = vld [vmem:[%s3813_s1 + $0xc8] sm:$0xff] }
  0x2f   : > { %743 = vmatprep.subr.bf16.mxu0 %v490_v33  ;;  %v434_v44 = vadd.f32 %v364_v42, %v294_v40  ;;  %v293_v45 = vld [vmem:[%s3812_s0 + $0x90] sm:$0xff]  ;;  %2276 = vmatmul.mubr.msk.bf16.vlgmr.msra.gmra.mrb[0].mxu1 %vm538_vm0, %v2872_v22  ;;  %v491_v47 = vpack.c.bf16 %v428_v37, %v421_v35  ;;  %v441_v48 = vadd.f32 %v371_v43, %v301_v41  ;;  %v295_v51 = vld [vmem:[%s3812_s0 + $0xa0] sm:$0xff]  ;;  %v302_v54 = vld [vmem:[%s3812_s0 + $0xd8] sm:$0xff] }
  0x30   : > { %744 = vmatpush1.bf16.msra.mxu0 %v489_v36  ;;  %v363_v49 = vld [vmem:[%s3813_s1 + $0x90] sm:$0xff]  ;;  %599 = vmatprep.mubr.bf16.mxu0 %v2553_v7  ;;  %v440_v53 = vadd.f32 %v370_v50, %v300_v46  ;;  %v365_v55 = vld [vmem:[%s3813_s1 + $0xa0] sm:$0xff]  ;;  %v372_v56 = vld [vmem:[%s3813_s1 + $0xd8] sm:$0xff] }
  0x31   : > { %692 = vmatprep.mubr.bf16.mxu1 %v2553_v7  ;;  %v433_v52 = vadd.f32 %v363_v49, %v293_v45  ;;  %2403 = vmatprep.subr.bf16.mxu1 %v491_v47  ;;  %v497_v57 = vpack.c.bf16 %v441_v48, %v434_v44  ;;  %v435_v58 = vadd.f32 %v365_v55, %v295_v51  ;;  %v308_v60 = vld [vmem:[%s3812_s0 + $0x108] sm:$0xff]  ;;  %v315_v63 = vld [vmem:[%s3812_s0 + $0x140] sm:$0xff]  ;;  %v314_v6 = vld [vmem:[%s3812_s0 + $0x138] sm:$0xff] }
  0x32   : > { %v442_v59 = vadd.f32 %v372_v56, %v302_v54  ;;  %2404 = vmatpush3.bf16.msra.mxu1 %v491_v47  ;;  %v378_v0 = vld [vmem:[%s3813_s1 + $0x108] sm:$0xff]  ;;  %v385_v1 = vld [vmem:[%s3813_s1 + $0x140] sm:$0xff]  ;;  %v384_v9 = vld [vmem:[%s3813_s1 + $0x138] sm:$0xff] }
  0x33   : > { %v496_v62 = vpack.c.bf16 %v440_v53, %v433_v52  ;;  %745 = vmatprep.subr.bf16.mxu0 %v497_v57  ;;  %v448_v3 = vadd.f32 %v378_v0, %v308_v60  ;;  %v455_v4 = vadd.f32 %v385_v1, %v315_v63  ;;  %v307_v5 = vld [vmem:[%s3812_s0 + $0x100] sm:$0xff]  ;;  %v309_v11 = vld [vmem:[%s3812_s0 + $0x110] sm:$0xff]  ;;  %v316_v12 = vld [vmem:[%s3812_s0 + $0x148] sm:$0xff]  ;;  %v454_v15 = vadd.f32 %v384_v9, %v314_v6 }
  0x34   : > { %v498_v2 = vpack.c.bf16 %v442_v59, %v435_v58  ;;  %v377_v8 = vld [vmem:[%s3813_s1 + $0x100] sm:$0xff]  ;;  %v379_v16 = vld [vmem:[%s3813_s1 + $0x110] sm:$0xff]  ;;  %v386_v17 = vld [vmem:[%s3813_s1 + $0x148] sm:$0xff] }
  0x35   : > { %746 = vmatpush1.bf16.msra.mxu0 %v496_v62  ;;  %v447_v10 = vadd.f32 %v377_v8, %v307_v5  ;;  %v524_v13 = vld [vmem:[%s2829_s30 + $0x20] sm:$0xff]  ;;  %v504_v14 = vpack.c.bf16 %v455_v4, %v448_v3  ;;  %v525_v18 = vld [vmem:[%s2829_s30 + $0x28] sm:$0xff]  ;;  %v449_v19 = vadd.f32 %v379_v16, %v309_v11  ;;  %v456_v20 = vadd.f32 %v386_v17, %v316_v12  ;;  %v322_v21 = vld [vmem:[%s3812_s0 + $0x178] sm:$0xff] }
  0x36   : > { %2405 = vmatprep.subr.bf16.mxu1 %v498_v2  ;;  %2271 = vmatmul.mubr.msk.bf16.gmra.mrb[4].mxu0 %vm538_vm0, %v2942_v61  ;;  %v329_v23 = vld [vmem:[%s3812_s0 + $0x1b0] sm:$0xff]  ;;  %v392_v25 = vld [vmem:[%s3813_s1 + $0x178] sm:$0xff]  ;;  %v328_v31 = vld [vmem:[%s3812_s0 + $0x1a8] sm:$0xff]  ;;  %v3018_v39 = vpack.c.bf16 %v525_v18, %v524_v13 }
  0x37   : > { %2406 = vmatpush3.bf16.msra.mxu1 %v498_v2  ;;  %609 = vmatprep.mubr.bf16.mxu0 %v2553_v7  ;;  %v503_v24 = vpack.c.bf16 %v454_v15, %v447_v10  ;;  %v399_v26 = vld [vmem:[%s3813_s1 + $0x1b0] sm:$0xff]  ;;  %v505_v28 = vpack.c.bf16 %v456_v20, %v449_v19  ;;  %v462_v29 = vadd.f32 %v392_v25, %v322_v21  ;;  %v398_v33 = vld [vmem:[%s3813_s1 + $0x1a8] sm:$0xff]  ;;  %v323_v36 = vld [vmem:[%s3812_s0 + $0x180] sm:$0xff] }
  0x38   : > { %2277 = vmatmul.mubr.msk.bf16.gmra.mrb[4].mxu1 %vm538_vm0, %v2942_v61  ;;  %v321_v27 = vld [vmem:[%s3812_s0 + $0x170] sm:$0xff]  ;;  %747 = vmatprep.subr.bf16.mxu0 %v504_v14  ;;  %v469_v30 = vadd.f32 %v399_v26, %v329_v23  ;;  %v468_v35 = vadd.f32 %v398_v33, %v328_v31  ;;  %v330_v37 = vld [vmem:[%s3812_s0 + $0x1b8] sm:$0xff]  ;;  %v393_v38 = vld [vmem:[%s3813_s1 + $0x180] sm:$0xff] }
  0x39   : > { %702 = vmatprep.mubr.bf16.mxu1 %v2553_v7  ;;  %v391_v32 = vld [vmem:[%s3813_s1 + $0x170] sm:$0xff]  ;;  %748 = vmatpush1.bf16.msra.mxu0 %v503_v24  ;;  %v400_v41 = vld [vmem:[%s3813_s1 + $0x1b8] sm:$0xff]  ;;  %v463_v42 = vadd.f32 %v393_v38, %v323_v36  ;;  %v336_v45 = vld [vmem:[%s3812_s0 + $0x1e8] sm:$0xff] }
  0x3a   : > { %v461_v34 = vadd.f32 %v391_v32, %v321_v27  ;;  %2407 = vmatprep.subr.bf16.mxu1 %v505_v28  ;;  %v511_v40 = vpack.c.bf16 %v469_v30, %v462_v29  ;;  %v470_v44 = vadd.f32 %v400_v41, %v330_v37  ;;  %v343_v46 = vld [vmem:[%s3812_s0 + $0x220] sm:$0xff]  ;;  %v406_v47 = vld [vmem:[%s3813_s1 + $0x1e8] sm:$0xff]  ;;  %v526_v50 = vld [vmem:[%s2829_s30 + $0x30] sm:$0xff] }
  0x3b   : > { %2408 = vmatpush3.bf16.msra.mxu1 %v505_v28  ;;  %v413_v48 = vld [vmem:[%s3813_s1 + $0x220] sm:$0xff]  ;;  %v476_v49 = vadd.f32 %v406_v47, %v336_v45  ;;  %v342_v54 = vld [vmem:[%s3812_s0 + $0x218] sm:$0xff]  ;;  %v337_v58 = vld [vmem:[%s3812_s0 + $0x1f0] sm:$0xff] }
  0x3c   : > { %v510_v43 = vpack.c.bf16 %v468_v35, %v461_v34  ;;  %749 = vmatprep.subr.bf16.mxu0 %v511_v40  ;;  %v512_v51 = vpack.c.bf16 %v470_v44, %v463_v42  ;;  %v483_v52 = vadd.f32 %v413_v48, %v343_v46  ;;  %v335_v53 = vld [vmem:[%s3812_s0 + $0x1e0] sm:$0xff]  ;;  %v412_v56 = vld [vmem:[%s3813_s1 + $0x218] sm:$0xff]  ;;  %v344_v59 = vld [vmem:[%s3812_s0 + $0x228] sm:$0xff] }
  0x3d   : > { %v405_v55 = vld [vmem:[%s3813_s1 + $0x1e0] sm:$0xff]  ;;  %v527_v60 = vld [vmem:[%s2829_s30 + $0x38] sm:$0xff]  ;;  %v482_v63 = vadd.f32 %v412_v56, %v342_v54  ;;  %v407_v0 = vld [vmem:[%s3813_s1 + $0x1f0] sm:$0xff] }
  0x3e   : > { %750 = vmatpush1.bf16.msra.mxu0 %v510_v43  ;;  %v475_v57 = vadd.f32 %v405_v55, %v335_v53  ;;  %v518_v62 = vpack.c.bf16 %v483_v52, %v476_v49  ;;  %v414_v1 = vld [vmem:[%s3813_s1 + $0x228] sm:$0xff]  ;;  %2409 = vmatprep.subr.bf16.mxu1 %v512_v51  ;;  %v477_v2 = vadd.f32 %v407_v0, %v337_v58  ;;  %v528_v8 = vld [vmem:[%s2829_s30 + $0x40] sm:$0xff]  ;;  %v530_v11 = vld [vmem:[%s2829_s30 + $0x50] sm:$0xff] }
  0x3f   : > { %2272 = vmatmul.mubr.msk.bf16.gmra.mrb[8].mxu0 %vm538_vm0, %v3018_v39  ;;  %v484_v3 = vadd.f32 %v414_v1, %v344_v59  ;;  %2410 = vmatpush3.bf16.msra.mxu1 %v512_v51  ;;  %v535_v5 = vpack.c.bf16 %v527_v60, %v526_v50  ;;  %v529_v9 = vld [vmem:[%s2829_s30 + $0x48] sm:$0xff]  ;;  %v531_v12 = vld [vmem:[%s2829_s30 + $0x58] sm:$0xff] }
  0x40   : > { %2278 = vmatmul.mubr.msk.bf16.gmra.mrb[8].mxu1 %vm538_vm0, %v3018_v39  ;;  %619 = vmatprep.mubr.bf16.mxu0 %v2553_v7  ;;  %v517_v4 = vpack.c.bf16 %v482_v63, %v475_v57  ;;  %v536_v10 = vpack.c.bf16 %v529_v9, %v528_v8  ;;  %v537_v13 = vpack.c.bf16 %v531_v12, %v530_v11 }
  0x41   : > { %712 = vmatprep.mubr.bf16.mxu1 %v2553_v7  ;;  %751 = vmatprep.subr.bf16.mxu0 %v518_v62  ;;  %v519_v6 = vpack.c.bf16 %v484_v3, %v477_v2 }
  0x42   : > { %752 = vmatpush1.bf16.msra.mxu0 %v517_v4 }
  0x43   : > { %2411 = vmatprep.subr.bf16.mxu1 %v519_v6 }
  0x44   : > { %2412 = vmatpush3.bf16.msra.mxu1 %v519_v6 }
  0x47   : > { %2273 = vmatmul.mubr.msk.bf16.gmra.mrb[12].mxu0 %vm538_vm0, %v535_v5 }
  0x48   : > { %2279 = vmatmul.mubr.msk.bf16.gmra.mrb[12].mxu1 %vm538_vm0, %v535_v5  ;;  %629 = vmatprep.mubr.bf16.mxu0 %v2553_v7 }
  0x49   : > { %722 = vmatprep.mubr.bf16.mxu1 %v2553_v7 }
  0x4f   : > { %2274 = vmatmul.mubr.msk.bf16.gmra.mrb[16].mxu0 %vm538_vm0, %v536_v10 }
  0x50   : > { %2280 = vmatmul.mubr.msk.bf16.gmra.mrb[16].mxu1 %vm538_vm0, %v536_v10  ;;  %639 = vmatprep.mubr.bf16.mxu0 %v2553_v7 }
  0x51   : > { %732 = vmatprep.mubr.bf16.mxu1 %v2553_v7 }
  0x57   : > { %2275 = vmatmul.mubr.msk.bf16.gmra.mrb[20].mxu0 %vm538_vm0, %v537_v13 }
  0x58   : > { %2281 = vmatmul.mubr.msk.bf16.gmra.mrb[20].mxu1 %vm538_vm0, %v537_v13  ;;  %775 = vmatprep.mubr.bf16.mxu0 %v2553_v7 }
  0x59   : > { %2413 = vmatprep.mubr.msk.bf16.mxu1 %vm538_vm0, %v2872_v22 }
  0x5f   : > { %2282 = vmatmul.mubr.msk.bf16.vlgmr.msra.gmra.mrb[24].mxu0 %vm538_vm0, %v2872_v22 }
  0x60   : > { %2414 = vmatmul.mubr.msk.bf16.vlgmr.msra.gmra.mrb[24].mxu1 %vm538_vm0, %v2942_v61  ;;  %785 = vmatprep.mubr.bf16.mxu0 %v2553_v7 }
  0x61   : > { %2417 = vmatprep.mubr.msk.bf16.mxu1 %vm538_vm0, %v3018_v39 }
  0x67   : > { %2283 = vmatmul.mubr.msk.bf16.gmra.mrb[28].mxu0 %vm538_vm0, %v2942_v61 }
  0x68   : > { %795 = vmatprep.mubr.bf16.mxu0 %v2553_v7  ;;  %2418 = vmatmul.mubr.msk.bf16.gmra.mrb[28].mxu1 %vm538_vm0, %v535_v5 }
  0x69   : > { %2421 = vmatprep.mubr.msk.bf16.mxu1 %vm538_vm0, %v536_v10 }
  0x6f   : > { %2284 = vmatmul.mubr.msk.bf16.gmra.mrb[32].mxu0 %vm538_vm0, %v3018_v39 }
  0x70   : > { %805 = vmatprep.mubr.bf16.mxu0 %v2553_v7  ;;  %2422 = vmatmul.mubr.msk.bf16.gmra.mrb[32].mxu1 %vm538_vm0, %v537_v13 }
  0x77   : > { %2285 = vmatmul.mubr.msk.bf16.gmra.mrb[36].mxu0 %vm538_vm0, %v535_v5 }
  0x78   : > { %815 = vmatprep.mubr.bf16.mxu0 %v2553_v7 }
  0x7f   : > { %2286 = vmatmul.mubr.msk.bf16.gmra.mrb[40].mxu0 %vm538_vm0, %v536_v10 }
  0x80   : > { %825 = vmatprep.mubr.bf16.mxu0 %v2553_v7 }
  0x87   : > { %2287 = vmatmul.mubr.msk.bf16.gmra.mrb[44].mxu0 %vm538_vm0, %v537_v13 }
 0x101   : > { %v3105_v22 = vpop.f32.mrb[0].mxu0 }
 0x102   : > { %917 = vst [vmem:[#allocation2] sm:$0xff] %v3105_v22  ;;  %v3108_v61 = vpop.f32.mrb[0].mxu1  ;;  %v3110_v14 = vpop.f32.mrb[1].mxu0 }
 0x103   : > { %919 = vst [vmem:[#allocation2 + $0x10] sm:$0xff] %v3108_v61  ;;  %918 = vst [vmem:[#allocation2 + $0x8] sm:$0xff] %v3110_v14  ;;  %v3114_v15 = vpop.f32.mrb[1].mxu1  ;;  %v3116_v16 = vpop.f32.mrb[2].mxu0  ;;  %v1086_v7 = vadd.f32 %v3110_v14, %v3105_v22 }
 0x104   : > { %920 = vst [vmem:[#allocation2 + $0x18] sm:$0xff] %v3114_v15  ;;  %925 = vst [vmem:[#allocation2 + $0x38] sm:$0xff] %v3116_v16  ;;  %v3122_v17 = vpop.f32.mrb[2].mxu1  ;;  %v3124_v18 = vpop.f32.mrb[3].mxu0 }
 0x105   : > { %927 = vst [vmem:[#allocation2 + $0x48] sm:$0xff] %v3122_v17  ;;  %926 = vst [vmem:[#allocation2 + $0x40] sm:$0xff] %v3124_v18  ;;  %v3128_v19 = vpop.f32.mrb[3].mxu1  ;;  %v1087_v20 = vadd.f32 %v1086_v7, %v3108_v61  ;;  %v1095_v21 = vadd.f32 %v3124_v18, %v3116_v16 }
 0x106   : > { %928 = vst [vmem:[#allocation2 + $0x50] sm:$0xff] %v3128_v19 }
 0x107   : > { %v3135_v23 = vadd.f32 %v1087_v20, %v3114_v15  ;;  %v1096_v24 = vadd.f32 %v1095_v21, %v3122_v17 }
 0x109   : > { %v3138_v25 = vpop.f32.mrb[4].mxu0  ;;  %v3141_v26 = vadd.f32 %v1096_v24, %v3128_v19 }
 0x10a   : > { %932 = vst [vmem:[#allocation2 + $0x70] sm:$0xff] %v3138_v25  ;;  %v3146_v28 = vpop.f32.mrb[5].mxu0 }
 0x10b   : > { %v3144_v27 = vpop.f32.mrb[4].mxu1  ;;  %933 = vst [vmem:[#allocation2 + $0x78] sm:$0xff] %v3146_v28  ;;  %v3152_v30 = vpop.f32.mrb[6].mxu0  ;;  %v1104_v31 = vadd.f32 %v3146_v28, %v3138_v25 }
 0x10c   : > { %934 = vst [vmem:[#allocation2 + $0x80] sm:$0xff] %v3144_v27  ;;  %v3150_v29 = vpop.f32.mrb[5].mxu1  ;;  %939 = vst [vmem:[#allocation2 + $0xa8] sm:$0xff] %v3152_v30  ;;  %v3160_v33 = vpop.f32.mrb[7].mxu0 }
 0x10d   : > { %935 = vst [vmem:[#allocation2 + $0x88] sm:$0xff] %v3150_v29  ;;  %v3158_v32 = vpop.f32.mrb[6].mxu1  ;;  %940 = vst [vmem:[#allocation2 + $0xb0] sm:$0xff] %v3160_v33  ;;  %v1105_v35 = vadd.f32 %v1104_v31, %v3144_v27  ;;  %v1113_v36 = vadd.f32 %v3160_v33, %v3152_v30 }
 0x10e   : > { %941 = vst [vmem:[#allocation2 + $0xb8] sm:$0xff] %v3158_v32  ;;  %v3164_v34 = vpop.f32.mrb[7].mxu1 }
 0x10f   : > { %942 = vst [vmem:[#allocation2 + $0xc0] sm:$0xff] %v3164_v34  ;;  %v3171_v37 = vadd.f32 %v1105_v35, %v3150_v29  ;;  %v1114_v38 = vadd.f32 %v1113_v36, %v3158_v32 }
 0x111   : > { %v3177_v40 = vadd.f32 %v1114_v38, %v3164_v34 }
 0x112   : > { %v3174_v39 = vpop.f32.mrb[8].mxu0 }
 0x113   : > { %946 = vst [vmem:[#allocation2 + $0xe0] sm:$0xff] %v3174_v39  ;;  %v3180_v41 = vpop.f32.mrb[8].mxu1  ;;  %v3182_v42 = vpop.f32.mrb[9].mxu0 }
 0x114   : > { %948 = vst [vmem:[#allocation2 + $0xf0] sm:$0xff] %v3180_v41  ;;  %947 = vst [vmem:[#allocation2 + $0xe8] sm:$0xff] %v3182_v42  ;;  %v3186_v43 = vpop.f32.mrb[9].mxu1  ;;  %v3188_v44 = vpop.f32.mrb[10].mxu0  ;;  %v1122_v45 = vadd.f32 %v3182_v42, %v3174_v39 }
 0x115   : > { %949 = vst [vmem:[#allocation2 + $0xf8] sm:$0xff] %v3186_v43  ;;  %953 = vst [vmem:[#allocation2 + $0x118] sm:$0xff] %v3188_v44  ;;  %v3194_v46 = vpop.f32.mrb[10].mxu1  ;;  %v3196_v47 = vpop.f32.mrb[11].mxu0 }
 0x116   : > { %955 = vst [vmem:[#allocation2 + $0x128] sm:$0xff] %v3194_v46  ;;  %954 = vst [vmem:[#allocation2 + $0x120] sm:$0xff] %v3196_v47  ;;  %v3200_v48 = vpop.f32.mrb[11].mxu1  ;;  %v1123_v49 = vadd.f32 %v1122_v45, %v3180_v41  ;;  %v1131_v50 = vadd.f32 %v3196_v47, %v3188_v44 }
 0x117   : > { %956 = vst [vmem:[#allocation2 + $0x130] sm:$0xff] %v3200_v48 }
 0x118   : > { %v3207_v51 = vadd.f32 %v1123_v49, %v3186_v43  ;;  %v1132_v52 = vadd.f32 %v1131_v50, %v3194_v46 }
 0x11a   : > { %v3210_v53 = vpop.f32.mrb[12].mxu0  ;;  %v3213_v54 = vadd.f32 %v1132_v52, %v3200_v48 }
 0x11b   : > { %960 = vst [vmem:[#allocation2 + $0x150] sm:$0xff] %v3210_v53  ;;  %v3216_v55 = vpop.f32.mrb[12].mxu1  ;;  %v3218_v56 = vpop.f32.mrb[13].mxu0 }
 0x11c   : > { %962 = vst [vmem:[#allocation2 + $0x160] sm:$0xff] %v3216_v55  ;;  %961 = vst [vmem:[#allocation2 + $0x158] sm:$0xff] %v3218_v56  ;;  %v3222_v57 = vpop.f32.mrb[13].mxu1  ;;  %v3224_v58 = vpop.f32.mrb[14].mxu0  ;;  %v1140_v59 = vadd.f32 %v3218_v56, %v3210_v53 }
 0x11d   : > { %3853 = vst [vmem:[#allocation3_spill] sm:$0xff] %v3222_v57  ;;  %3854 = vst [vmem:[#allocation4_spill] sm:$0xff] %v3224_v58  ;;  %v3230_v60 = vpop.f32.mrb[14].mxu1  ;;  %v3232_v62 = vpop.f32.mrb[15].mxu0 }
 0x11e   : > { %963 = vst [vmem:[#allocation2 + $0x168] sm:$0xff] %v3222_v57  ;;  %967 = vst [vmem:[#allocation2 + $0x188] sm:$0xff] %v3224_v58  ;;  %v3236_v63 = vpop.f32.mrb[15].mxu1  ;;  %v1141_v0 = vadd.f32 %v1140_v59, %v3216_v55  ;;  %v1149_v1 = vadd.f32 %v3232_v62, %v3224_v58 }
 0x11f   : > { %3855 = vst [vmem:[#allocation5_spill] sm:$0xff] %v3230_v60  ;;  %3856 = vst [vmem:[#allocation6_spill] sm:$0xff] %v3232_v62 }
 0x120   : > { %969 = vst [vmem:[#allocation2 + $0x198] sm:$0xff] %v3230_v60  ;;  %968 = vst [vmem:[#allocation2 + $0x190] sm:$0xff] %v3232_v62  ;;  %v3243_v2 = vadd.f32 %v1141_v0, %v3222_v57  ;;  %v1150_v3 = vadd.f32 %v1149_v1, %v3230_v60 }
 0x121   : > { %3857 = vst [vmem:[#allocation7_spill] sm:$0xff] %v3236_v63  ;;  %970 = vst [vmem:[#allocation2 + $0x1a0] sm:$0xff] %v3236_v63 }
 0x122   : > { %v3246_v4 = vpop.f32.mrb[16].mxu0  ;;  %v3249_v5 = vadd.f32 %v1150_v3, %v3236_v63 }
 0x123   : > { %3858 = vst [vmem:[#allocation8_spill] sm:$0xff] %v3246_v4  ;;  %974 = vst [vmem:[#allocation2 + $0x1c0] sm:$0xff] %v3246_v4  ;;  %v3252_v6 = vpop.f32.mrb[16].mxu1  ;;  %v3254_v8 = vpop.f32.mrb[17].mxu0 }
 0x124   : > { %3859 = vst [vmem:[#allocation9_spill] sm:$0xff] %v3252_v6  ;;  %3860 = vst [vmem:[#allocation10_spill] sm:$0xff] %v3254_v8  ;;  %v3258_v9 = vpop.f32.mrb[17].mxu1  ;;  %v3260_v10 = vpop.f32.mrb[18].mxu0  ;;  %v1158_v11 = vadd.f32 %v3254_v8, %v3246_v4 }
 0x125   : > { %976 = vst [vmem:[#allocation2 + $0x1d0] sm:$0xff] %v3252_v6  ;;  %975 = vst [vmem:[#allocation2 + $0x1c8] sm:$0xff] %v3254_v8  ;;  %v3266_v12 = vpop.f32.mrb[18].mxu1  ;;  %v3268_v13 = vpop.f32.mrb[19].mxu0 }
 0x126   : > { %3861 = vst [vmem:[#allocation11_spill] sm:$0xff] %v3258_v9  ;;  %3862 = vst [vmem:[#allocation12_spill] sm:$0xff] %v3260_v10  ;;  %v3272_v7 = vpop.f32.mrb[19].mxu1  ;;  %v1159_v20 = vadd.f32 %v1158_v11, %v3252_v6  ;;  %v1167_v21 = vadd.f32 %v3268_v13, %v3260_v10 }
 0x127   : > { %977 = vst [vmem:[#allocation2 + $0x1d8] sm:$0xff] %v3258_v9  ;;  %981 = vst [vmem:[#allocation2 + $0x1f8] sm:$0xff] %v3260_v10 }
 0x128   : > { %3863 = vst [vmem:[#allocation13_spill] sm:$0xff] %v3266_v12  ;;  %3864 = vst [vmem:[#allocation14_spill] sm:$0xff] %v3268_v13  ;;  %v3279_v24 = vadd.f32 %v1159_v20, %v3258_v9  ;;  %v1168_v31 = vadd.f32 %v1167_v21, %v3266_v12 }
 0x129   : > { %983 = vst [vmem:[#allocation2 + $0x208] sm:$0xff] %v3266_v12  ;;  %982 = vst [vmem:[#allocation2 + $0x200] sm:$0xff] %v3268_v13 }
 0x12a   : > { %3865 = vst [vmem:[#allocation15_spill] sm:$0xff] %v3272_v7  ;;  %984 = vst [vmem:[#allocation2 + $0x210] sm:$0xff] %v3272_v7  ;;  %v3282_v35 = vpop.f32.mrb[20].mxu0  ;;  %v3285_v36 = vadd.f32 %v1168_v31, %v3272_v7 }
 0x12b   : > { %3866 = vst [vmem:[#allocation16_spill] sm:$0xff] %v3282_v35  ;;  %988 = vst [vmem:[#allocation2 + $0x230] sm:$0xff] %v3282_v35  ;;  %v3288_v38 = vpop.f32.mrb[20].mxu1  ;;  %v3290_v45 = vpop.f32.mrb[21].mxu0 }
 0x12c   : > { %3867 = vst [vmem:[#allocation17_spill] sm:$0xff] %v3288_v38  ;;  %3868 = vst [vmem:[#allocation18_spill] sm:$0xff] %v3290_v45  ;;  %v3294_v49 = vpop.f32.mrb[21].mxu1  ;;  %v3296_v50 = vpop.f32.mrb[22].mxu0  ;;  %v1176_v52 = vadd.f32 %v3290_v45, %v3282_v35 }
 0x12d   : > { %990 = vst [vmem:[#allocation2 + $0x240] sm:$0xff] %v3288_v38  ;;  %989 = vst [vmem:[#allocation2 + $0x238] sm:$0xff] %v3290_v45  ;;  %v3302_v59 = vpop.f32.mrb[22].mxu1  ;;  %v3304_v0 = vpop.f32.mrb[23].mxu0 }
 0x12e   : > { %3869 = vst [vmem:[#allocation19_spill] sm:$0xff] %v3294_v49  ;;  %3870 = vst [vmem:[#allocation20_spill] sm:$0xff] %v3296_v50  ;;  %v3308_v1 = vpop.f32.mrb[23].mxu1  ;;  %v1177_v3 = vadd.f32 %v1176_v52, %v3288_v38  ;;  %v1185_v11 = vadd.f32 %v3304_v0, %v3296_v50 }
 0x12f   : > { %991 = vst [vmem:[#allocation2 + $0x248] sm:$0xff] %v3294_v49  ;;  %995 = vst [vmem:[#allocation2 + $0x268] sm:$0xff] %v3296_v50 }
 0x130   : > { %3871 = vst [vmem:[#allocation21_spill] sm:$0xff] %v3302_v59  ;;  %3872 = vst [vmem:[#allocation22_spill] sm:$0xff] %v3304_v0  ;;  %v3315_v20 = vadd.f32 %v1177_v3, %v3294_v49  ;;  %v1186_v21 = vadd.f32 %v1185_v11, %v3302_v59 }
 0x131   : > { %997 = vst [vmem:[#allocation2 + $0x278] sm:$0xff] %v3302_v59  ;;  %996 = vst [vmem:[#allocation2 + $0x270] sm:$0xff] %v3304_v0 }
 0x132   : > { %3873 = vst [vmem:[#allocation23_spill] sm:$0xff] %v3308_v1  ;;  %998 = vst [vmem:[#allocation2 + $0x280] sm:$0xff] %v3308_v1  ;;  %v3318_v31 = vpop.f32.mrb[24].mxu0  ;;  %v3321_v45 = vadd.f32 %v1186_v21, %v3308_v1 }
 0x133   : > { %921 = vst [vmem:[#allocation2 + $0x20] sm:$0xff] %v3318_v31  ;;  %v2415_v35 = vpop.f32.mrb[24].mxu1  ;;  %v3324_v52 = vpop.f32.mrb[25].mxu0  ;;  %v1089_v0 = vadd.f32 %v3135_v23, %v3318_v31 }
 0x134   : > { %938 = vst.msk [vmem:[#allocation2 + $0xa0] sm:$0xff] %vm923_vm1, %v2415_v35  ;;  %922 = vst [vmem:[#allocation2 + $0x28] sm:$0xff] %v3324_v52  ;;  %v870_v3 = vpop.f32.mrb[25].mxu1  ;;  %v3330_v11 = vpop.f32.mrb[26].mxu0 }
 0x135   : > { %924 = vst.msk [vmem:[#allocation2 + $0x30] sm:$0xff] %vm923_vm1, %v870_v3  ;;  %929 = vst [vmem:[#allocation2 + $0x58] sm:$0xff] %v3330_v11  ;;  %v2416_v21 = vpop.f32.mrb[26].mxu1  ;;  %v3334_v1 = vpop.f32.mrb[27].mxu0  ;;  %v1090_v59 = vadd.f32 %v1089_v0, %v3324_v52  ;;  %v1098_v50 = vadd.f32 %v3141_v26, %v3330_v11 }
 0x136   : > { %945 = vst.msk [vmem:[#allocation2 + $0xd8] sm:$0xff] %vm923_vm1, %v2416_v21  ;;  %930 = vst [vmem:[#allocation2 + $0x60] sm:$0xff] %v3334_v1  ;;  %v873_v23 = vpop.f32.mrb[27].mxu1 }
 0x137   : > { %931 = vst.msk [vmem:[#allocation2 + $0x68] sm:$0xff] %vm923_vm1, %v873_v23  ;;  %v1099_v35 = vadd.f32 %v1098_v50, %v3334_v1 }
 0x13a   : > { %v3343_v3 = vpop.f32.mrb[28].mxu0 }
 0x13b   : > { %936 = vst [vmem:[#allocation2 + $0x90] sm:$0xff] %v3343_v3  ;;  %v3346_v49 = vpop.f32.mrb[29].mxu0  ;;  %v2419_v38 = vpop.f32.mrb[28].mxu1  ;;  %v3348_v0 = vld [vmem:[#allocation2 + $0xa0] sm:$0xff]  ;;  %v1107_v26 = vadd.f32 %v3171_v37, %v3343_v3 }
 0x13c   : > { %937 = vst [vmem:[#allocation2 + $0x98] sm:$0xff] %v3346_v49  ;;  %v3353_v21 = vpop.f32.mrb[30].mxu0  ;;  %v3355_v7 = vld [vmem:[#allocation2 + $0x30] sm:$0xff]  ;;  %966 = vst.msk [vmem:[#allocation2 + $0x180] sm:$0xff] %vm923_vm1, %v2419_v38  ;;  %v886_v50 = vpop.f32.mrb[29].mxu1  ;;  %v1109_v8 = vsel %vm923_vm1, %v3348_v0, 0.0 }
 0x13d   : > { %943 = vst [vmem:[#allocation2 + $0xc8] sm:$0xff] %v3353_v21  ;;  %v3359_v23 = vpop.f32.mrb[31].mxu0  ;;  %v1091_v12 = vsel %vm923_vm1, %v3355_v7, 0.0  ;;  %952 = vst.msk [vmem:[#allocation2 + $0x110] sm:$0xff] %vm923_vm1, %v886_v50  ;;  %v2420_v13 = vpop.f32.mrb[30].mxu1  ;;  %v1108_v37 = vadd.f32 %v1107_v26, %v3346_v49  ;;  %v1116_v10 = vadd.f32 %v3177_v40, %v3353_v21  ;;  %v3376_v4 = vld [vmem:[#allocation2 + $0xd8] sm:$0xff] }
 0x13e   : > { %944 = vst [vmem:[#allocation2 + $0xd0] sm:$0xff] %v3359_v23  ;;  %v1092_v9 = vadd.f32 %v1091_v12, %v1090_v59  ;;  %v3368_v38 = vld [vmem:[#allocation2 + $0x68] sm:$0xff]  ;;  %973 = vst.msk [vmem:[#allocation2 + $0x1b8] sm:$0xff] %vm923_vm1, %v2420_v13  ;;  %v889_v6 = vpop.f32.mrb[31].mxu1  ;;  %v1118_v13 = vsel %vm923_vm1, %v3376_v4, 0.0 }
 0x13f   : > { %v1100_v50 = vsel %vm923_vm1, %v3368_v38, 0.0  ;;  %959 = vst.msk [vmem:[#allocation2 + $0x148] sm:$0xff] %vm923_vm1, %v889_v6  ;;  %v1110_v26 = vadd.f32 %v1109_v8, %v1108_v37  ;;  %v1117_v40 = vadd.f32 %v1116_v10, %v3359_v23 }
 0x140   : > { %1093 = vadd.xlane.f32.xlu0 %v1092_v9  ;;  %v1101_v59 = vadd.f32 %v1100_v50, %v1099_v35 }
 0x141   : > { %1111 = vadd.xlane.f32.xlu1 %v1110_v26  ;;  %v1119_v60 = vadd.f32 %v1118_v13, %v1117_v40 }
 0x142   : > { %v3379_v12 = vpop.f32.mrb[32].mxu0 }
 0x143   : > { %950 = vst [vmem:[#allocation2 + $0x100] sm:$0xff] %v3379_v12  ;;  %v3384_v63 = vpop.f32.mrb[33].mxu0  ;;  %v1125_v6 = vadd.f32 %v3207_v51, %v3379_v12  ;;  %v2423_v8 = vpop.f32.mrb[32].mxu1  ;;  %v3411_v62 = vld [vmem:[#allocation2 + $0x180] sm:$0xff] }
 0x144   : > { %951 = vst [vmem:[#allocation2 + $0x108] sm:$0xff] %v3384_v63  ;;  %v3389_v10 = vpop.f32.mrb[34].mxu0  ;;  %1102 = vadd.xlane.f32.xlu0 %v1101_v59  ;;  %v3391_v9 = vld [vmem:[#allocation2 + $0x110] sm:$0xff]  ;;  %994 = vst.msk [vmem:[#allocation2 + $0x260] sm:$0xff] %vm923_vm1, %v2423_v8  ;;  %v902_v35 = vpop.f32.mrb[33].mxu1 }
 0x145   : > { %957 = vst [vmem:[#allocation2 + $0x138] sm:$0xff] %v3389_v10  ;;  %v3395_v37 = vpop.f32.mrb[35].mxu0  ;;  %1120 = vadd.xlane.f32.xlu1 %v1119_v60  ;;  %v1126_v50 = vadd.f32 %v1125_v6, %v3384_v63  ;;  %v1127_v51 = vsel %vm923_vm1, %v3391_v9, 0.0  ;;  %v1134_v26 = vadd.f32 %v3213_v54, %v3389_v10  ;;  %980 = vst.msk [vmem:[#allocation2 + $0x1f0] sm:$0xff] %vm923_vm1, %v902_v35  ;;  %v2424_v40 = vpop.f32.mrb[34].mxu1 }
 0x146   : > { %958 = vst [vmem:[#allocation2 + $0x140] sm:$0xff] %v3395_v37  ;;  %v3404_v59 = vld [vmem:[#allocation2 + $0x148] sm:$0xff]  ;;  %1001 = vst.msk [vmem:[#allocation2 + $0x298] sm:$0xff] %vm923_vm1, %v2424_v40  ;;  %v905_v13 = vpop.f32.mrb[35].mxu1  ;;  %v1145_v40 = vsel %vm923_vm1, %v3411_v62, 0.0 }
 0x147   : > { %v1128_v8 = vadd.f32 %v1127_v51, %v1126_v50  ;;  %v1135_v60 = vadd.f32 %v1134_v26, %v3395_v37  ;;  %v1136_v6 = vsel %vm923_vm1, %v3404_v59, 0.0  ;;  %987 = vst.msk [vmem:[#allocation2 + $0x228] sm:$0xff] %vm923_vm1, %v905_v13  ;;  %3874 = vst [vmem:[#allocation24_spill] sm:$0xff] %v3411_v62  ;;  %v3420_v51 = vld [vmem:[#allocation2 + $0x1b8] sm:$0xff] }
 0x149   : > { %1129 = vadd.xlane.f32.xlu0 %v1128_v8  ;;  %v1137_v54 = vadd.f32 %v1136_v6, %v1135_v60 }
 0x14a   : > { %v3413_v35 = vpop.f32.mrb[36].mxu0 }
 0x14b   : > { %3875 = vst [vmem:[#allocation25_spill] sm:$0xff] %v3413_v35  ;;  %964 = vst [vmem:[#allocation2 + $0x170] sm:$0xff] %v3413_v35  ;;  %v3416_v58 = vpop.f32.mrb[37].mxu0  ;;  %1138 = vadd.xlane.f32.xlu1 %v1137_v54  ;;  %v1143_v50 = vadd.f32 %v3243_v2, %v3413_v35  ;;  %v1154_v2 = vsel %vm923_vm1, %v3420_v51, 0.0 }
 0x14c   : > { %965 = vst [vmem:[#allocation2 + $0x178] sm:$0xff] %v3416_v58  ;;  %v3423_v26 = vpop.f32.mrb[38].mxu0  ;;  %v3437_v62 = vld [vmem:[#allocation2 + $0x1f0] sm:$0xff] }
 0x14d   : > { %3876 = vst [vmem:[#allocation26_spill] sm:$0xff] %v3423_v26  ;;  %971 = vst [vmem:[#allocation2 + $0x1a8] sm:$0xff] %v3423_v26  ;;  %v3428_v13 = vpop.f32.mrb[39].mxu0  ;;  %v1144_v8 = vadd.f32 %v1143_v50, %v3416_v58  ;;  %v1152_v60 = vadd.f32 %v3249_v5, %v3423_v26 }
 0x14e   : > { %3877 = vst [vmem:[#allocation27_spill] sm:$0xff] %v3428_v13  ;;  %972 = vst [vmem:[#allocation2 + $0x1b0] sm:$0xff] %v3428_v13  ;;  %v3446_v26 = vld [vmem:[#allocation2 + $0x228] sm:$0xff] }
 0x14f   : > { %v1146_v6 = vadd.f32 %v1145_v40, %v1144_v8  ;;  %v1153_v54 = vadd.f32 %v1152_v60, %v3428_v13  ;;  %3878 = vst [vmem:[#allocation28_spill] sm:$0xff] %v3437_v62  ;;  %3880 = vst [vmem:[#allocation30_spill] sm:$0xff] %v3446_v26  ;;  %v1163_v8 = vsel %vm923_vm1, %v3437_v62, 0.0  ;;  %v3463_v62 = vld [vmem:[#allocation2 + $0x260] sm:$0xff] }
 0x150   : > { %3883 = vst [vmem:[#allocation33_spill] sm:$0xff] %v3463_v62 }
 0x151   : > { %1147 = vadd.xlane.f32.xlu0 %v1146_v6  ;;  %v1155_v35 = vadd.f32 %v1154_v2, %v1153_v54 }
 0x152   : > { %v3439_v57 = vpop.f32.mrb[40].mxu0 }
 0x153   : > { %3879 = vst [vmem:[#allocation29_spill] sm:$0xff] %v3439_v57  ;;  %978 = vst [vmem:[#allocation2 + $0x1e0] sm:$0xff] %v3439_v57  ;;  %v3442_v50 = vpop.f32.mrb[41].mxu0  ;;  %1156 = vadd.xlane.f32.xlu1 %v1155_v35  ;;  %v1161_v5 = vadd.f32 %v3279_v24, %v3439_v57  ;;  %v1172_v24 = vsel %vm923_vm1, %v3446_v26, 0.0 }
 0x154   : > { %979 = vst [vmem:[#allocation2 + $0x1e8] sm:$0xff] %v3442_v50  ;;  %v3449_v40 = vpop.f32.mrb[42].mxu0 }
 0x155   : > { %3881 = vst [vmem:[#allocation31_spill] sm:$0xff] %v3449_v40  ;;  %985 = vst [vmem:[#allocation2 + $0x218] sm:$0xff] %v3449_v40  ;;  %v3454_v60 = vpop.f32.mrb[43].mxu0  ;;  %v1162_v2 = vadd.f32 %v1161_v5, %v3442_v50  ;;  %v1170_v35 = vadd.f32 %v3285_v36, %v3449_v40  ;;  %v3472_v40 = vld [vmem:[#allocation2 + $0x298] sm:$0xff] }
 0x156   : > { %3882 = vst [vmem:[#allocation32_spill] sm:$0xff] %v3454_v60  ;;  %986 = vst [vmem:[#allocation2 + $0x220] sm:$0xff] %v3454_v60 }
 0x157   : > { %v1164_v6 = vadd.f32 %v1163_v8, %v1162_v2  ;;  %v1171_v54 = vadd.f32 %v1170_v35, %v3454_v60  ;;  %3885 = vst [vmem:[#allocation35_spill] sm:$0xff] %v3472_v40  ;;  %v1181_v2 = vsel %vm923_vm1, %v3463_v62, 0.0 }
 0x159   : > { %1165 = vadd.xlane.f32.xlu0 %v1164_v6  ;;  %v1173_v57 = vadd.f32 %v1172_v24, %v1171_v54 }
 0x15a   : > { %v3465_v13 = vpop.f32.mrb[44].mxu0 }
 0x15b   : > { %3884 = vst [vmem:[#allocation34_spill] sm:$0xff] %v3465_v13  ;;  %992 = vst [vmem:[#allocation2 + $0x250] sm:$0xff] %v3465_v13  ;;  %v3468_v5 = vpop.f32.mrb[45].mxu0  ;;  %1174 = vadd.xlane.f32.xlu1 %v1173_v57  ;;  %v1179_v36 = vadd.f32 %v3315_v20, %v3465_v13  ;;  %v1190_v20 = vsel %vm923_vm1, %v3472_v40, 0.0 }
 0x15c   : > { %993 = vst [vmem:[#allocation2 + $0x258] sm:$0xff] %v3468_v5  ;;  %v3475_v8 = vpop.f32.mrb[46].mxu0 }
 0x15d   : > { %3886 = vst [vmem:[#allocation36_spill] sm:$0xff] %v3475_v8  ;;  %999 = vst [vmem:[#allocation2 + $0x288] sm:$0xff] %v3475_v8  ;;  %v3480_v35 = vpop.f32.mrb[47].mxu0  ;;  %v1180_v24 = vadd.f32 %v1179_v36, %v3468_v5  ;;  %v1188_v57 = vadd.f32 %v3321_v45, %v3475_v8 }
 0x15e   : > { %1000 = vst [vmem:[#allocation2 + $0x290] sm:$0xff] %v3480_v35 }
 0x15f   : > { %v1182_v6 = vadd.f32 %v1181_v2, %v1180_v24  ;;  %v1189_v54 = vadd.f32 %v1188_v57, %v3480_v35 }
 0x161   : > { %1183 = vadd.xlane.f32.xlu0 %v1182_v6  ;;  %v1191_v13 = vadd.f32 %v1190_v20, %v1189_v54 }
 0x163   : > { %1192 = vadd.xlane.f32.xlu1 %v1191_v13 }
 0x1cd   : > { %v1094_v62 = vpop.xlane.xlu0 %1093 }
 0x1ce   : > { %v3489_v26 = vmul.f32 0.0012755102, %v1094_v62  ;;  %v1112_v60 = vpop.xlane.xlu1 %1111 }
 0x1cf   : > { %v3497_v2 = vmul.f32 0.0012755102, %v1112_v60 }
 0x1d0   : > { %3887 = vst [vmem:[#allocation37_spill] sm:$0xff] %v3489_v26  ;;  %v1206_v36 = vsub.f32 %v3105_v22, %v3489_v26  ;;  %v1207_v45 = vsub.f32 %v3110_v14, %v3489_v26  ;;  %v1208_v8 = vsub.f32 %v3108_v61, %v3489_v26  ;;  %v1209_v24 = vsub.f32 %v3114_v15, %v3489_v26 }
 0x1d1   : > { %v1103_v40 = vpop.xlane.xlu0 %1102  ;;  %v1212_v62 = vsub.f32 %v3355_v7, %v3489_v26  ;;  %v1210_v22 = vsub.f32 %v3318_v31, %v3489_v26  ;;  %v1211_v14 = vsub.f32 %v3324_v52, %v3489_v26  ;;  %v1220_v31 = vsub.f32 %v3138_v25, %v3497_v2 }
 0x1d2   : > { %v3503_v13 = vmul.f32 0.0012755102, %v1103_v40  ;;  %v1290_v57 = vmul.f32 %v1206_v36, %v1206_v36  ;;  %v1291_v20 = vmul.f32 %v1207_v45, %v1207_v45  ;;  %v1292_v61 = vmul.f32 %v1208_v8, %v1208_v8  ;;  %v1121_v6 = vpop.xlane.xlu1 %1120 }
 0x1d3   : > { %v1296_v60 = vmul.f32 %v1212_v62, %v1212_v62  ;;  %v1293_v40 = vmul.f32 %v1209_v24, %v1209_v24 }
 0x1d4   : > { %v1374_v54 = vadd.f32 %v1291_v20, %v1290_v57  ;;  %v1213_v15 = vsub.f32 %v3116_v16, %v3503_v13  ;;  %v1214_v7 = vsub.f32 %v3124_v18, %v3503_v13  ;;  %v1215_v36 = vsub.f32 %v3122_v17, %v3503_v13 }
 0x1d5   : > { %v1216_v52 = vsub.f32 %v3128_v19, %v3503_v13  ;;  %v1217_v8 = vsub.f32 %v3330_v11, %v3503_v13  ;;  %v3521_v57 = vmul.f32 0.0012755102, %v1121_v6  ;;  %v1294_v20 = vmul.f32 %v1210_v22, %v1210_v22 }
 0x1d6   : > { %v1375_v45 = vadd.f32 %v1374_v54, %v1292_v61  ;;  %v1297_v62 = vmul.f32 %v1213_v15, %v1213_v15  ;;  %v1130_v16 = vpop.xlane.xlu0 %1129  ;;  %v1219_v18 = vsub.f32 %v3368_v38, %v3503_v13  ;;  %v1298_v24 = vmul.f32 %v1214_v7, %v1214_v7 }
 0x1d7   : > { %v1295_v17 = vmul.f32 %v1211_v14, %v1211_v14  ;;  %v1379_v25 = vsel %vm923_vm1, %v1296_v60, 0.0  ;;  %v1218_v61 = vsub.f32 %v3334_v1, %v3503_v13  ;;  %v1299_v19 = vmul.f32 %v1215_v36, %v1215_v36 }
 0x1d8   : > { %v1376_v26 = vadd.f32 %v1375_v45, %v1293_v40  ;;  %v1383_v54 = vadd.f32 %v1298_v24, %v1297_v62  ;;  %v1221_v11 = vsub.f32 %v3146_v28, %v3497_v2  ;;  %v1222_v6 = vsub.f32 %v3144_v27, %v3497_v2  ;;  %v1139_v1 = vpop.xlane.xlu1 %1138 }
 0x1d9   : > { %v3532_v22 = vmul.f32 0.0012755102, %v1130_v16  ;;  %v1300_v38 = vmul.f32 %v1216_v52, %v1216_v52  ;;  %v1301_v7 = vmul.f32 %v1217_v8, %v1217_v8  ;;  %v1303_v14 = vmul.f32 %v1219_v18, %v1219_v18 }
 0x1da   : > { %v1377_v15 = vadd.f32 %v1376_v26, %v1294_v20  ;;  %v1384_v40 = vadd.f32 %v1383_v54, %v1299_v19  ;;  %v1223_v60 = vsub.f32 %v3150_v29, %v3497_v2  ;;  %v1304_v45 = vmul.f32 %v1220_v31, %v1220_v31 }
 0x1db   : > { %v1224_v62 = vsub.f32 %v3343_v3, %v3497_v2  ;;  %v1225_v28 = vsub.f32 %v3346_v49, %v3497_v2  ;;  %v1305_v27 = vmul.f32 %v1221_v11, %v1221_v11  ;;  %v1302_v16 = vmul.f32 %v1218_v61, %v1218_v61 }
 0x1dc   : > { %v1378_v36 = vadd.f32 %v1377_v15, %v1295_v17  ;;  %v1385_v24 = vadd.f32 %v1384_v40, %v1300_v38  ;;  %v1226_v26 = vsub.f32 %v3348_v0, %v3497_v2  ;;  %v1306_v52 = vmul.f32 %v1222_v6, %v1222_v6 }
 0x1dd   : > { %v1392_v20 = vadd.f32 %v1305_v27, %v1304_v45  ;;  %v1227_v29 = vsub.f32 %v3152_v30, %v3521_v57  ;;  %v1228_v31 = vsub.f32 %v3160_v33, %v3521_v57  ;;  %v3546_v18 = vmul.f32 0.0012755102, %v1139_v1 }
 0x1de   : > { %v1380_v8 = vadd.f32 %v1379_v25, %v1378_v36  ;;  %v1386_v3 = vadd.f32 %v1385_v24, %v1301_v7  ;;  %v1388_v49 = vsel %vm923_vm1, %v1303_v14, 0.0  ;;  %v1229_v17 = vsub.f32 %v3158_v32, %v3521_v57  ;;  %v1148_v61 = vpop.xlane.xlu0 %1147 }
 0x1df   : > { %v1307_v0 = vmul.f32 %v1223_v60, %v1223_v60  ;;  %v1308_v19 = vmul.f32 %v1224_v62, %v1224_v62  ;;  %v1309_v25 = vmul.f32 %v1225_v28, %v1225_v28  ;;  %v1393_v54 = vadd.f32 %v1392_v20, %v1306_v52 }
 0x1e0   : > { %1381 = vadd.xlane.f32.xlu0 %v1380_v8  ;;  %v1387_v11 = vadd.f32 %v1386_v3, %v1302_v16  ;;  %v1310_v6 = vmul.f32 %v1226_v26, %v1226_v26  ;;  %v1233_v30 = vsub.f32 %v3376_v4, %v3521_v57  ;;  %v1311_v33 = vmul.f32 %v1227_v29, %v1227_v29  ;;  %v1157_v15 = vpop.xlane.xlu1 %1156 }
 0x1e1   : > { %v1394_v38 = vadd.f32 %v1393_v54, %v1307_v0  ;;  %v1230_v7 = vsub.f32 %v3164_v34, %v3521_v57  ;;  %v1231_v32 = vsub.f32 %v3353_v21, %v3521_v57  ;;  %v1312_v14 = vmul.f32 %v1228_v31, %v1228_v31 }
 0x1e2   : > { %v1389_v40 = vadd.f32 %v1388_v49, %v1387_v11  ;;  %v3557_v60 = vmul.f32 0.0012755102, %v1148_v61  ;;  %v1232_v45 = vsub.f32 %v3359_v23, %v3521_v57  ;;  %v1313_v1 = vmul.f32 %v1229_v17, %v1229_v17 }
 0x1e3   : > { %v1395_v36 = vadd.f32 %v1394_v38, %v1308_v19  ;;  %v1401_v62 = vadd.f32 %v1312_v14, %v1311_v33  ;;  %v1234_v4 = vsub.f32 %v3174_v39, %v3532_v22  ;;  %v1235_v28 = vsub.f32 %v3182_v42, %v3532_v22 }
 0x1e4   : > { %1390 = vadd.xlane.f32.xlu1 %v1389_v40  ;;  %v3565_v34 = vmul.f32 0.0012755102, %v1157_v15  ;;  %v1397_v21 = vsel %vm923_vm1, %v1310_v6, 0.0  ;;  %v1317_v27 = vmul.f32 %v1233_v30, %v1233_v30  ;;  %v1236_v16 = vsub.f32 %v3180_v41, %v3532_v22 }
 0x1e5   : > { %v1396_v24 = vadd.f32 %v1395_v36, %v1309_v25  ;;  %v1314_v23 = vmul.f32 %v1230_v7, %v1230_v7  ;;  %v1315_v26 = vmul.f32 %v1231_v32, %v1231_v32  ;;  %v1402_v52 = vadd.f32 %v1401_v62, %v1313_v1 }
 0x1e6   : > { %v1166_v8 = vpop.xlane.xlu0 %1165  ;;  %v1237_v39 = vsub.f32 %v3186_v43, %v3532_v22  ;;  %v1238_v42 = vsub.f32 %v3379_v12, %v3532_v22  ;;  %v1318_v20 = vmul.f32 %v1234_v4, %v1234_v4  ;;  %v1319_v29 = vmul.f32 %v1235_v28, %v1235_v28 }
 0x1e7   : > { %v1398_v31 = vadd.f32 %v1397_v21, %v1396_v24  ;;  %v1316_v3 = vmul.f32 %v1232_v45, %v1232_v45  ;;  %v1403_v49 = vadd.f32 %v1402_v52, %v1314_v23  ;;  %v1240_v17 = vsub.f32 %v3391_v9, %v3532_v22 }
 0x1e8   : > { %v1406_v41 = vsel %vm923_vm1, %v1317_v27, 0.0  ;;  %v1239_v61 = vsub.f32 %v3384_v63, %v3532_v22  ;;  %v1320_v0 = vmul.f32 %v1236_v16, %v1236_v16  ;;  %v1410_v19 = vadd.f32 %v1319_v29, %v1318_v20  ;;  %v1175_v11 = vpop.xlane.xlu1 %1174 }
 0x1e9   : > { %1399 = vadd.xlane.f32.xlu0 %v1398_v31  ;;  %v1404_v43 = vadd.f32 %v1403_v49, %v1315_v26  ;;  %v3579_v25 = vmul.f32 0.0012755102, %v1166_v8  ;;  %v1241_v12 = vsub.f32 %v3188_v44, %v3546_v18  ;;  %v1242_v54 = vsub.f32 %v3196_v47, %v3546_v18  ;;  %v3888_v26 = vld [vmem:[#allocation3_spill] sm:$0xff] }
 0x1ea   : > { %v1321_v6 = vmul.f32 %v1237_v39, %v1237_v39  ;;  %v1322_v9 = vmul.f32 %v1238_v42, %v1238_v42  ;;  %v1411_v30 = vadd.f32 %v1410_v19, %v1320_v0  ;;  %v1243_v33 = vsub.f32 %v3194_v46, %v3546_v18  ;;  %v3891_v0 = vld [vmem:[#allocation4_spill] sm:$0xff] }
 0x1eb   : > { %v1405_v63 = vadd.f32 %v1404_v43, %v1316_v3  ;;  %v1324_v15 = vmul.f32 %v1240_v17, %v1240_v17  ;;  %v1244_v38 = vsub.f32 %v3200_v48, %v3546_v18  ;;  %v1325_v7 = vmul.f32 %v1241_v12, %v1241_v12  ;;  %v3892_v43 = vld [vmem:[#allocation6_spill] sm:$0xff] }
 0x1ec   : > { %v1412_v32 = vadd.f32 %v1411_v30, %v1321_v6  ;;  %v1245_v44 = vsub.f32 %v3389_v10, %v3546_v18  ;;  %v1247_v47 = vsub.f32 %v3404_v59, %v3546_v18  ;;  %v1326_v14 = vmul.f32 %v1242_v54, %v1242_v54  ;;  %v3893_v54 = vld [vmem:[#allocation5_spill] sm:$0xff] }
 0x1ed   : > { %v1407_v40 = vadd.f32 %v1406_v41, %v1405_v63  ;;  %v3593_v45 = vmul.f32 0.0012755102, %v1175_v11  ;;  %v1323_v1 = vmul.f32 %v1239_v61, %v1239_v61  ;;  %v1246_v46 = vsub.f32 %v3395_v37, %v3546_v18 }
 0x1ee   : > { %v1413_v36 = vadd.f32 %v1412_v32, %v1322_v9  ;;  %v1327_v62 = vmul.f32 %v1243_v33, %v1243_v33  ;;  %v1419_v4 = vadd.f32 %v1326_v14, %v1325_v7  ;;  %v1248_v48 = vsub.f32 %v3210_v53, %v3557_v60  ;;  %v1184_v23 = vpop.xlane.xlu0 %1183  ;;  %v3889_v53 = vld [vmem:[#allocation25_spill] sm:$0xff] }
 0x1ef   : > { %1408 = vadd.xlane.f32.xlu1 %v1407_v40  ;;  %v1415_v10 = vsel %vm923_vm1, %v1324_v15, 0.0  ;;  %v1328_v28 = vmul.f32 %v1244_v38, %v1244_v38  ;;  %v1249_v59 = vsub.f32 %v3218_v56, %v3557_v60  ;;  %v1250_v21 = vsub.f32 %v3216_v55, %v3557_v60  ;;  %v3890_v56 = vld [vmem:[#allocation24_spill] sm:$0xff]  ;;  %v3894_v15 = vld [vmem:[#allocation7_spill] sm:$0xff] }
 0x1f0   : > { %v1414_v27 = vadd.f32 %v1413_v36, %v1323_v1  ;;  %v1329_v16 = vmul.f32 %v1245_v44, %v1245_v44  ;;  %v1331_v24 = vmul.f32 %v1247_v47, %v1247_v47  ;;  %v1420_v37 = vadd.f32 %v1419_v4, %v1327_v62  ;;  %v1193_v32 = vpop.xlane.xlu1 %1192  ;;  %v3895_v47 = vld [vmem:[#allocation26_spill] sm:$0xff]  ;;  %v3896_v62 = vld [vmem:[#allocation27_spill] sm:$0xff] }
 0x1f1   : > { %v1251_v52 = vsub.f32 %v3888_v26, %v3557_v60  ;;  %v1252_v8 = vsub.f32 %v3889_v53, %v3557_v60  ;;  %v1332_v39 = vmul.f32 %v1248_v48, %v1248_v48  ;;  %v1333_v42 = vmul.f32 %v1249_v59, %v1249_v59  ;;  %v3897_v59 = vld [vmem:[#allocation8_spill] sm:$0xff] }
 0x1f2   : > { %v1416_v20 = vadd.f32 %v1415_v10, %v1414_v27  ;;  %v1330_v29 = vmul.f32 %v1246_v46, %v1246_v46  ;;  %v1421_v31 = vadd.f32 %v1420_v37, %v1328_v28  ;;  %v1254_v3 = vsub.f32 %v3890_v56, %v3557_v60  ;;  %v3898_v27 = vld [vmem:[#allocation10_spill] sm:$0xff] }
 0x1f3   : > { %v3610_v55 = vmul.f32 0.0012755102, %v1184_v23  ;;  %v1253_v49 = vsub.f32 %v3416_v58, %v3557_v60  ;;  %v1334_v17 = vmul.f32 %v1250_v21, %v1250_v21  ;;  %v1428_v41 = vadd.f32 %v1333_v42, %v1332_v39  ;;  %v3899_v23 = vld [vmem:[#allocation9_spill] sm:$0xff]  ;;  %v3900_v42 = vld [vmem:[#allocation11_spill] sm:$0xff] }
 0x1f4   : > { %1417 = vadd.xlane.f32.xlu0 %v1416_v20  ;;  %v1422_v61 = vadd.f32 %v1421_v31, %v1329_v16  ;;  %v1255_v19 = vsub.f32 %v3891_v0, %v3565_v34  ;;  %v1256_v12 = vsub.f32 %v3892_v43, %v3565_v34  ;;  %v1257_v11 = vsub.f32 %v3893_v54, %v3565_v34 }
 0x1f5   : > { %v1424_v6 = vsel %vm923_vm1, %v1331_v24, 0.0  ;;  %v1335_v9 = vmul.f32 %v1251_v52, %v1251_v52  ;;  %v1336_v30 = vmul.f32 %v1252_v8, %v1252_v8  ;;  %v1429_v33 = vadd.f32 %v1428_v41, %v1334_v17 }
 0x1f6   : > { %v1423_v63 = vadd.f32 %v1422_v61, %v1330_v29  ;;  %v1338_v58 = vmul.f32 %v1254_v3, %v1254_v3  ;;  %v1258_v38 = vsub.f32 %v3894_v15, %v3565_v34  ;;  %v1339_v7 = vmul.f32 %v1255_v19, %v1255_v19  ;;  %v3901_v29 = vld [vmem:[#allocation28_spill] sm:$0xff]  ;;  %v3902_v61 = vld [vmem:[#allocation29_spill] sm:$0xff] }
 0x1f7   : > { %v1430_v44 = vadd.f32 %v1429_v33, %v1335_v9  ;;  %v1259_v14 = vsub.f32 %v3895_v47, %v3565_v34  ;;  %v1261_v40 = vsub.f32 %v3420_v51, %v3565_v34  ;;  %v1340_v1 = vmul.f32 %v1256_v12, %v1256_v12  ;;  %v3903_v12 = vld [vmem:[#allocation12_spill] sm:$0xff] }
 0x1f8   : > { %v1425_v46 = vadd.f32 %v1424_v6, %v1423_v63  ;;  %v1337_v36 = vmul.f32 %v1253_v49, %v1253_v49  ;;  %v1260_v4 = vsub.f32 %v3896_v62, %v3565_v34  ;;  %v1341_v48 = vmul.f32 %v1257_v11, %v1257_v11  ;;  %v3904_v11 = vld [vmem:[#allocation14_spill] sm:$0xff]  ;;  %v3905_v63 = vld [vmem:[#allocation13_spill] sm:$0xff] }
 0x1f9   : > { %v1431_v10 = vadd.f32 %v1430_v44, %v1336_v30  ;;  %v1437_v28 = vadd.f32 %v1340_v1, %v1339_v7  ;;  %v1262_v21 = vsub.f32 %v3897_v59, %v3579_v25  ;;  %v1263_v16 = vsub.f32 %v3898_v27, %v3579_v25  ;;  %v3910_v27 = vld [vmem:[#allocation16_spill] sm:$0xff] }
 0x1fa   : > { %1426 = vadd.xlane.f32.xlu1 %v1425_v46  ;;  %v3633_v24 = vmul.f32 0.0012755102, %v1193_v32  ;;  %v1433_v51 = vsel %vm923_vm1, %v1338_v58, 0.0  ;;  %v1342_v37 = vmul.f32 %v1258_v38, %v1258_v38  ;;  %v1264_v26 = vsub.f32 %v3899_v23, %v3579_v25  ;;  %v3906_v32 = vld [vmem:[#allocation15_spill] sm:$0xff]  ;;  %v3911_v23 = vld [vmem:[#allocation18_spill] sm:$0xff] }
 0x1fb   : > { %v1432_v52 = vadd.f32 %v1431_v10, %v1337_v36  ;;  %v1343_v53 = vmul.f32 %v1259_v14, %v1259_v14  ;;  %v1345_v8 = vmul.f32 %v1261_v40, %v1261_v40  ;;  %v1438_v39 = vadd.f32 %v1437_v28, %v1341_v48  ;;  %v3907_v14 = vld [vmem:[#allocation31_spill] sm:$0xff]  ;;  %v3909_v48 = vld [vmem:[#allocation30_spill] sm:$0xff] }
 0x1fc   : > { %v1265_v20 = vsub.f32 %v3900_v42, %v3579_v25  ;;  %v1268_v31 = vsub.f32 %v3901_v29, %v3579_v25  ;;  %v1346_v56 = vmul.f32 %v1262_v21, %v1262_v21  ;;  %v1347_v3 = vmul.f32 %v1263_v16, %v1263_v16 }
 0x1fd   : > { %v1434_v49 = vadd.f32 %v1433_v51, %v1432_v52  ;;  %v1344_v17 = vmul.f32 %v1260_v4, %v1260_v4  ;;  %v1439_v41 = vadd.f32 %v1438_v39, %v1342_v37  ;;  %v1266_v0 = vsub.f32 %v3902_v61, %v3579_v25  ;;  %v3908_v4 = vld [vmem:[#allocation32_spill] sm:$0xff]  ;;  %v3912_v52 = vld [vmem:[#allocation17_spill] sm:$0xff] }
 0x1fe   : > { %v1348_v19 = vmul.f32 %v1264_v26, %v1264_v26  ;;  %v1446_v43 = vadd.f32 %v1347_v3, %v1346_v56  ;;  %v1269_v54 = vsub.f32 %v3903_v12, %v3593_v45  ;;  %v1270_v6 = vsub.f32 %v3904_v11, %v3593_v45 }
 0x1ff   : > { %1435 = vadd.xlane.f32.xlu0 %v1434_v49  ;;  %v1440_v9 = vadd.f32 %v1439_v41, %v1343_v53  ;;  %v1442_v30 = vsel %vm923_vm1, %v1345_v8, 0.0  ;;  %v1267_v33 = vsub.f32 %v3442_v50, %v3579_v25  ;;  %v1271_v58 = vsub.f32 %v3905_v63, %v3593_v45 }
 0x200   : > { %v1349_v15 = vmul.f32 %v1265_v20, %v1265_v20  ;;  %v1352_v38 = vmul.f32 %v1268_v31, %v1268_v31  ;;  %v1447_v7 = vadd.f32 %v1446_v43, %v1348_v19  ;;  %v1272_v44 = vsub.f32 %v3906_v32, %v3593_v45  ;;  %v3913_v31 = vld [vmem:[#allocation19_spill] sm:$0xff]  ;;  %v3918_v32 = vld [vmem:[#allocation21_spill] sm:$0xff] }
 0x201   : > { %v1441_v47 = vadd.f32 %v1440_v9, %v1344_v17  ;;  %v1273_v40 = vsub.f32 %v3907_v14, %v3593_v45  ;;  %v1353_v1 = vmul.f32 %v1269_v54, %v1269_v54  ;;  %v1354_v46 = vmul.f32 %v1270_v6, %v1270_v6  ;;  %v3915_v9 = vld [vmem:[#allocation33_spill] sm:$0xff] }
 0x202   : > { %v1350_v36 = vmul.f32 %v1266_v0, %v1266_v0  ;;  %v1448_v62 = vadd.f32 %v1447_v7, %v1349_v15  ;;  %v1274_v50 = vsub.f32 %v3908_v4, %v3593_v45  ;;  %v1275_v10 = vsub.f32 %v3909_v48, %v3593_v45  ;;  %v3914_v0 = vld [vmem:[#allocation34_spill] sm:$0xff] }
 0x203   : > { %v1443_v28 = vadd.f32 %v1442_v30, %v1441_v47  ;;  %v1355_v59 = vmul.f32 %v1271_v58, %v1271_v58  ;;  %v1455_v21 = vadd.f32 %v1354_v46, %v1353_v1  ;;  %v1276_v16 = vsub.f32 %v3910_v27, %v3610_v55  ;;  %v3917_v58 = vld [vmem:[#allocation22_spill] sm:$0xff]  ;;  %v3919_v46 = vld [vmem:[#allocation23_spill] sm:$0xff] }
 0x204   : > { %v1351_v51 = vmul.f32 %v1267_v33, %v1267_v33  ;;  %v1449_v37 = vadd.f32 %v1448_v62, %v1350_v36  ;;  %v1277_v26 = vsub.f32 %v3911_v23, %v3610_v55  ;;  %v1278_v53 = vsub.f32 %v3912_v52, %v3610_v55  ;;  %v3916_v33 = vld [vmem:[#allocation20_spill] sm:$0xff] }
 0x205   : > { %1444 = vadd.xlane.f32.xlu1 %v1443_v28  ;;  %v1451_v8 = vsel %vm923_vm1, %v1352_v38, 0.0  ;;  %v1356_v39 = vmul.f32 %v1272_v44, %v1272_v44  ;;  %v1357_v42 = vmul.f32 %v1273_v40, %v1273_v40  ;;  %v1456_v20 = vadd.f32 %v1455_v21, %v1355_v59  ;;  %v3920_v28 = vld [vmem:[#allocation36_spill] sm:$0xff] }
 0x206   : > { %v1450_v29 = vadd.f32 %v1449_v37, %v1351_v51  ;;  %v1279_v56 = vsub.f32 %v3913_v31, %v3610_v55  ;;  %v1360_v3 = vmul.f32 %v1276_v16, %v1276_v16  ;;  %v1361_v49 = vmul.f32 %v1277_v26, %v1277_v26  ;;  %v3921_v16 = vld [vmem:[#allocation35_spill] sm:$0xff] }
 0x207   : > { %v1358_v17 = vmul.f32 %v1274_v50, %v1274_v50  ;;  %v1359_v41 = vmul.f32 %v1275_v10, %v1275_v10  ;;  %v1457_v61 = vadd.f32 %v1456_v20, %v1356_v39  ;;  %v1280_v19 = vsub.f32 %v3914_v0, %v3610_v55 }
 0x208   : > { %v1452_v43 = vadd.f32 %v1451_v8, %v1450_v29  ;;  %v1281_v12 = vsub.f32 %v3468_v5, %v3610_v55  ;;  %v1362_v54 = vmul.f32 %v1278_v53, %v1278_v53  ;;  %v1464_v11 = vadd.f32 %v1361_v49, %v1360_v3 }
 0x209   : > { %v1458_v6 = vadd.f32 %v1457_v61, %v1357_v42  ;;  %v1282_v30 = vsub.f32 %v3915_v9, %v3610_v55  ;;  %v1283_v63 = vsub.f32 %v3916_v33, %v3633_v24  ;;  %v1284_v15 = vsub.f32 %v3917_v58, %v3633_v24 }
 0x20a   : > { %1453 = vadd.xlane.f32.xlu0 %v1452_v43  ;;  %v1363_v38 = vmul.f32 %v1279_v56, %v1279_v56  ;;  %v1465_v7 = vadd.f32 %v1464_v11, %v1362_v54  ;;  %v1285_v44 = vsub.f32 %v3918_v32, %v3633_v24  ;;  %v1460_v5 = vsel %vm923_vm1, %v1359_v41, 0.0  ;;  %v1518_v11 = vld [vmem:[%s3697_s17] sm:$0xff]  ;;  %v3922_v32 = vld [vmem:[#allocation37_spill] sm:$0xff] }
 0x20b   : > { %v1459_v47 = vadd.f32 %v1458_v6, %v1358_v17  ;;  %v1367_v14 = vmul.f32 %v1283_v63, %v1283_v63  ;;  %v1364_v40 = vmul.f32 %v1280_v19, %v1280_v19  ;;  %v1286_v36 = vsub.f32 %v3919_v46, %v3633_v24  ;;  %v1519_v63 = vld [vmem:[%s3697_s17 + $0x8] sm:$0xff] }
 0x20c   : > { %v1466_v1 = vadd.f32 %v1465_v7, %v1363_v38  ;;  %v1368_v62 = vmul.f32 %v1284_v15, %v1284_v15  ;;  %v1365_v50 = vmul.f32 %v1281_v12, %v1281_v12  ;;  %v1366_v48 = vmul.f32 %v1282_v30, %v1282_v30 }
 0x20d   : > { %v1461_v4 = vadd.f32 %v1460_v5, %v1459_v47  ;;  %v1287_v59 = vsub.f32 %v3920_v28, %v3633_v24  ;;  %v1369_v21 = vmul.f32 %v1285_v44, %v1285_v44  ;;  %v1289_v51 = vsub.f32 %v3921_v16, %v3633_v24  ;;  %v1542_v5 = vld [vmem:[%s3705_s22] sm:$0xff]  ;;  %v1521_v28 = vld [vmem:[%s3697_s17 + $0x18] sm:$0xff] }
 0x20e   : > { %v1467_v10 = vadd.f32 %v1466_v1, %v1364_v40  ;;  %v1473_v27 = vadd.f32 %v1368_v62, %v1367_v14  ;;  %v1288_v23 = vsub.f32 %v3480_v35, %v3633_v24  ;;  %v1370_v26 = vmul.f32 %v1286_v36, %v1286_v36  ;;  %v1543_v14 = vld [vmem:[%s3705_s22 + $0x8] sm:$0xff] }
 0x20f   : > { %1462 = vadd.xlane.f32.xlu1 %v1461_v4  ;;  %v1469_v53 = vsel %vm923_vm1, %v1366_v48, 0.0  ;;  %v1371_v39 = vmul.f32 %v1287_v59, %v1287_v59  ;;  %v1373_v20 = vmul.f32 %v1289_v51, %v1289_v51  ;;  %v1520_v4 = vld [vmem:[%s3697_s17 + $0x10] sm:$0xff]  ;;  %v1545_v51 = vld [vmem:[%s3705_s22 + $0x18] sm:$0xff] }
 0x210   : > { %v1468_v37 = vadd.f32 %v1467_v10, %v1365_v50  ;;  %v1474_v52 = vadd.f32 %v1473_v27, %v1369_v21  ;;  %v1372_v29 = vmul.f32 %v1288_v23, %v1288_v23 }
 0x211   : > { %v1478_v3 = vsel %vm923_vm1, %v1373_v20, 0.0  ;;  %v1522_v20 = vld [vmem:[%s3697_s17 + $0x20] sm:$0xff] }
 0x212   : > { %v1470_v8 = vadd.f32 %v1469_v53, %v1468_v37  ;;  %v1475_v42 = vadd.f32 %v1474_v52, %v1370_v26  ;;  %v1544_v26 = vld [vmem:[%s3705_s22 + $0x10] sm:$0xff] }
 0x214   : > { %1471 = vadd.xlane.f32.xlu0 %v1470_v8  ;;  %v1476_v31 = vadd.f32 %v1475_v42, %v1371_v39 }
 0x216   : > { %v1477_v56 = vadd.f32 %v1476_v31, %v1372_v29  ;;  %v1523_v31 = vld [vmem:[%s3697_s17 + $0x28] sm:$0xff] }
 0x218   : > { %v1479_v49 = vadd.f32 %v1478_v3, %v1477_v56 }
 0x21a   : > { %1480 = vadd.xlane.f32.xlu1 %v1479_v49 }
 0x26d   : > { %v1382_v17 = vpop.xlane.xlu0 %1381 }
 0x26e   : > { %v1482_v41 = vmul.f32 0.0012755102, %v1382_v17 }
 0x270   : > { %v1494_v35 = vadd.f32 1e-05, %v1482_v41  ;;  %v1547_v41 = vld [vmem:[%s3705_s22 + $0x28] sm:$0xff] }
 0x271   : > { %v1391_v61 = vpop.xlane.xlu1 %1390 }
 0x272   : > { %2437 = vrsqrt.f32 %v1494_v35  ;;  %v1483_v0 = vmul.f32 0.0012755102, %v1391_v61 }
 0x274   : > { %v1495_v19 = vadd.f32 1e-05, %v1483_v0 }
 0x276   : > { %2439 = vrsqrt.f32 %v1495_v19  ;;  %v1400_v43 = vpop.xlane.xlu0 %1399  ;;  %v1546_v19 = vld [vmem:[%s3705_s22 + $0x20] sm:$0xff] }
 0x277   : > { %v1484_v12 = vmul.f32 0.0012755102, %v1400_v43 }
 0x279   : > { %v1496_v54 = vadd.f32 1e-05, %v1484_v12 }
 0x27b   : > { %2441 = vrsqrt.f32 %v1496_v54 }
 0x27c   : > { %v2438_v6 = vpop.eup %2437  ;;  %v1409_v9 = vpop.xlane.xlu1 %1408 }
 0x27d   : > { %v1530_v30 = vmul.f32 %v2438_v6, %v1518_v11  ;;  %v1485_v33 = vmul.f32 0.0012755102, %v1409_v9  ;;  %v1524_v9 = vld [vmem:[%s3697_s17 + $0x30] sm:$0xff] }
 0x27f   : > { %1580 = vperm.xlu0 %2435, %v1530_v30   ;;  %v1497_v58 = vadd.f32 1e-05, %v1485_v33  ;;  %v1554_v44 = vmul.f32 %v1530_v30, %v3922_v32  ;;  %v1525_v33 = vld [vmem:[%s3697_s17 + $0x38] sm:$0xff] }
 0x280   : > { %v2440_v15 = vpop.eup %2439 }
 0x281   : > { %2443 = vrsqrt.f32 %v1497_v58  ;;  %v1418_v38 = vpop.xlane.xlu0 %1417  ;;  %v1531_v7 = vmul.f32 %v2440_v15, %v1519_v63  ;;  %v1566_v46 = vsub.f32 %v1542_v5, %v1554_v44 }
 0x282   : > { %v1486_v47 = vmul.f32 0.0012755102, %v1418_v38  ;;  %v1549_v38 = vld [vmem:[%s3705_s22 + $0x38] sm:$0xff] }
 0x283   : > { %1585 = vperm.xlu1 %2436, %v1531_v7   ;;  %v1555_v40 = vmul.f32 %v1531_v7, %v3503_v13 }
 0x284   : > { %v1498_v1 = vadd.f32 1e-05, %v1486_v47 }
 0x285   : > { %v1567_v36 = vsub.f32 %v1543_v14, %v1555_v40  ;;  %v2442_v62 = vpop.eup %2441  ;;  %v1548_v14 = vld [vmem:[%s3705_s22 + $0x30] sm:$0xff]  ;;  %v1526_v40 = vld [vmem:[%s3697_s17 + $0x40] sm:$0xff] }
 0x286   : > { %2445 = vrsqrt.f32 %v1498_v1  ;;  %v1532_v10 = vmul.f32 %v2442_v62, %v1520_v4 }
 0x287   : > { %v1427_v50 = vpop.xlane.xlu1 %1426  ;;  %1724 = vperm.xlu1 %2436, %v1566_v46   ;;  %1729 = vperm.xlu0 %2435, %v1567_v36   ;;  %v1527_v36 = vld [vmem:[%s3697_s17 + $0x48] sm:$0xff] }
 0x288   : > { %v1487_v48 = vmul.f32 0.0012755102, %v1427_v50  ;;  %v1556_v37 = vmul.f32 %v1532_v10, %v3497_v2 }
 0x28a   : > { %v1499_v59 = vadd.f32 1e-05, %v1487_v48  ;;  %v1568_v8 = vsub.f32 %v1544_v26, %v1556_v37  ;;  %v1529_v37 = vld [vmem:[%s3697_s17 + $0x58] sm:$0xff] }
 0x28b   : > { %v2444_v21 = vpop.eup %2443  ;;  %1590 = vperm.xlu1 %2436, %v1532_v10  }
 0x28c   : > { %2447 = vrsqrt.f32 %v1499_v59  ;;  %v1436_v13 = vpop.xlane.xlu0 %1435  ;;  %v1533_v27 = vmul.f32 %v2444_v21, %v1521_v28  ;;  %v1550_v59 = vld [vmem:[%s3705_s22 + $0x40] sm:$0xff]  ;;  %v1528_v21 = vld [vmem:[%s3697_s17 + $0x50] sm:$0xff] }
 0x28d   : > { %v1488_v16 = vmul.f32 0.0012755102, %v1436_v13 }
 0x28e   : > { %v1557_v23 = vmul.f32 %v1533_v27, %v3521_v57 }
 0x28f   : > { %1595 = vperm.xlu1 %2436, %v1533_v27   ;;  %v1500_v52 = vadd.f32 1e-05, %v1488_v16 }
 0x290   : > { %v1569_v53 = vsub.f32 %v1545_v51, %v1557_v23  ;;  %v2446_v39 = vpop.eup %2445 }
 0x291   : > { %2449 = vrsqrt.f32 %v1500_v52  ;;  %v1534_v3 = vmul.f32 %v2446_v39, %v1522_v20  ;;  %v1552_v52 = vld [vmem:[%s3705_s22 + $0x50] sm:$0xff] }
 0x292   : > { %v1445_v42 = vpop.xlane.xlu1 %1444  ;;  %1739 = vperm.xlu0 %2435, %v1569_v53  }
 0x293   : > { %v1489_v29 = vmul.f32 0.0012755102, %v1445_v42  ;;  %1734 = vperm.xlu1 %2436, %v1568_v8   ;;  %v1558_v61 = vmul.f32 %v1534_v3, %v3532_v22 }
 0x295   : > { %v1501_v56 = vadd.f32 1e-05, %v1489_v29  ;;  %v1570_v11 = vsub.f32 %v1546_v19, %v1558_v61  ;;  %v2461_v29 = vld [vmem:[#allocation2] sm:$0xff]  ;;  %v2467_v61 = vld [vmem:[#allocation2 + $0x38] sm:$0xff] }
 0x296   : > { %v2448_v2 = vpop.eup %2447  ;;  %v2468_v19 = vld [vmem:[#allocation2 + $0x40] sm:$0xff] }
 0x297   : > { %2451 = vrsqrt.f32 %v1501_v56  ;;  %v1454_v57 = vpop.xlane.xlu0 %1453  ;;  %v1535_v49 = vmul.f32 %v2448_v2, %v1523_v31  ;;  %1600 = vperm.xlu1 %2436, %v1534_v3   ;;  %v2462_v56 = vld [vmem:[#allocation2 + $0x8] sm:$0xff] }
 0x298   : > { %v1490_v17 = vmul.f32 0.0012755102, %v1454_v57  ;;  %v2464_v57 = vld [vmem:[#allocation2 + $0x18] sm:$0xff] }
 0x299   : > { %v1559_v35 = vmul.f32 %v1535_v49, %v3546_v18 }
 0x29a   : > { %v1502_v0 = vadd.f32 1e-05, %v1490_v17  ;;  %v2465_v17 = vld [vmem:[#allocation2 + $0x20] sm:$0xff] }
 0x29b   : > { %v1571_v43 = vsub.f32 %v1547_v41, %v1559_v35  ;;  %1605 = vperm.xlu1 %2436, %v1535_v49   ;;  %v2450_v6 = vpop.eup %2449  ;;  %v2466_v35 = vld [vmem:[#allocation2 + $0x28] sm:$0xff] }
 0x29c   : > { %2453 = vrsqrt.f32 %v1502_v0  ;;  %v1463_v12 = vpop.xlane.xlu1 %1462  ;;  %v1536_v63 = vmul.f32 %v2450_v6, %v1524_v9  ;;  %v2471_v9 = vld [vmem:[#allocation2 + $0x30] sm:$0xff] }
 0x29d   : > { %v1491_v54 = vmul.f32 0.0012755102, %v1463_v12  ;;  %1749 = vperm.xlu0 %2435, %v1571_v43   ;;  %v2469_v12 = vld [vmem:[#allocation2 + $0x48] sm:$0xff] }
 0x29e   : > { %v1560_v44 = vmul.f32 %v1536_v63, %v3557_v60 }
 0x29f   : > { %v1503_v30 = vadd.f32 1e-05, %v1491_v54  ;;  %1744 = vperm.xlu1 %2436, %v1570_v11   ;;  %v2470_v11 = vld [vmem:[#allocation2 + $0x50] sm:$0xff] }
 0x2a0   : > { %v1572_v62 = vsub.f32 %v1548_v14, %v1560_v44 }
 0x2a1   : > { %v2452_v18 = vpop.eup %2451  ;;  %2455 = vrsqrt.f32 %v1503_v30  ;;  %v1472_v22 = vpop.xlane.xlu0 %1471 }
 0x2a2   : > { %v1492_v58 = vmul.f32 0.0012755102, %v1472_v22  ;;  %v1537_v15 = vmul.f32 %v2452_v18, %v1525_v33  ;;  %v2472_v33 = vld [vmem:[#allocation2 + $0x58] sm:$0xff]  ;;  %v2473_v22 = vld [vmem:[#allocation2 + $0x60] sm:$0xff] }
 0x2a3   : > { %1610 = vperm.xlu1 %2436, %v1536_v63  }
 0x2a4   : > { %v1504_v7 = vadd.f32 1e-05, %v1492_v58  ;;  %v1561_v32 = vmul.f32 %v1537_v15, %v3565_v34  ;;  %v1551_v34 = vld [vmem:[%s3705_s22 + $0x48] sm:$0xff] }
 0x2a5   : > { %v2474_v58 = vld [vmem:[#allocation2 + $0x68] sm:$0xff] }
 0x2a6   : > { %v2454_v47 = vpop.eup %2453  ;;  %2457 = vrsqrt.f32 %v1504_v7  ;;  %v1573_v5 = vsub.f32 %v1549_v38, %v1561_v32 }
 0x2a7   : > { %v1481_v1 = vpop.xlane.xlu1 %1480  ;;  %1615 = vperm.xlu1 %2436, %v1537_v15   ;;  %v1538_v4 = vmul.f32 %v2454_v47, %v1526_v40 }
 0x2a8   : > { %v1493_v46 = vmul.f32 0.0012755102, %v1481_v1  ;;  %1759 = vperm.xlu0 %2435, %v1573_v5  }
 0x2a9   : > { %v1562_v10 = vmul.f32 %v1538_v4, %v3579_v25  ;;  %v1553_v25 = vld [vmem:[%s3705_s22 + $0x58] sm:$0xff] }
 0x2aa   : > { %v1505_v50 = vadd.f32 1e-05, %v1493_v46 }
 0x2ab   : > { %v2456_v48 = vpop.eup %2455  ;;  %1754 = vperm.xlu1 %2436, %v1572_v62   ;;  %v1574_v16 = vsub.f32 %v1550_v59, %v1562_v10 }
 0x2ac   : > { %2459 = vrsqrt.f32 %v1505_v50  ;;  %v1539_v60 = vmul.f32 %v2456_v48, %v1527_v36 }
 0x2ae   : > { %1625 = vperm.xlu0 %2435, %v1539_v60   ;;  %v1563_v28 = vmul.f32 %v1539_v60, %v3593_v45 }
 0x2af   : > { %1620 = vperm.xlu1 %2436, %v1538_v4  }
 0x2b0   : > { %v2458_v13 = vpop.eup %2457  ;;  %v1575_v27 = vsub.f32 %v1551_v34, %v1563_v28 }
 0x2b1   : > { %v1540_v51 = vmul.f32 %v2458_v13, %v1528_v21 }
 0x2b2   : > { %1769 = vperm.xlu0 %2435, %v1575_v27  }
 0x2b3   : > { %1764 = vperm.xlu1 %2436, %v1574_v16   ;;  %v1564_v23 = vmul.f32 %v1540_v51, %v3610_v55  ;;  %v2463_v55 = vld [vmem:[#allocation2 + $0x10] sm:$0xff] }
 0x2b5   : > { %v1576_v8 = vsub.f32 %v1552_v52, %v1564_v23 }
 0x2b6   : > { %v2460_v26 = vpop.eup %2459 }
 0x2b7   : > { %v1541_v53 = vmul.f32 %v2460_v26, %v1529_v37  ;;  %1630 = vperm.xlu1 %2436, %v1540_v51   ;;  %v2475_v37 = vld [vmem:[#allocation2 + $0x70] sm:$0xff]  ;;  %v2476_v26 = vld [vmem:[#allocation2 + $0x78] sm:$0xff] }
 0x2b9   : > { %1635 = vperm.xlu0 %2435, %v1541_v53   ;;  %v1565_v45 = vmul.f32 %v1541_v53, %v3633_v24 }
 0x2bb   : > { %v1577_v39 = vsub.f32 %v1553_v25, %v1565_v45  ;;  %1774 = vperm.xlu1 %2436, %v1576_v8   ;;  %v2477_v25 = vld [vmem:[#allocation2 + $0xa8] sm:$0xff]  ;;  %v2478_v8 = vld [vmem:[#allocation2 + $0xb0] sm:$0xff] }
 0x2bd   : > { %1779 = vperm.xlu0 %2435, %v1577_v39  }
 0x2fe   : > { %v1581_v42 = vpop.permute.xlu0 %1580 }
 0x2ff   : > { %v1638_v31 = vmul.f32 %v2461_v29, %v1581_v42  ;;  %v1639_v3 = vmul.f32 %v2462_v56, %v1581_v42  ;;  %v1640_v2 = vmul.f32 %v2463_v55, %v1581_v42  ;;  %v1641_v49 = vmul.f32 %v2464_v57, %v1581_v42  ;;  %v2480_v29 = vld [vmem:[#allocation2 + $0xc0] sm:$0xff]  ;;  %v2482_v55 = vld [vmem:[#allocation2 + $0xc8] sm:$0xff]  ;;  %v2483_v57 = vld [vmem:[#allocation2 + $0xd0] sm:$0xff] }
 0x300   : > { %v1642_v41 = vmul.f32 %v2465_v17, %v1581_v42  ;;  %v1643_v24 = vmul.f32 %v2466_v35, %v1581_v42  ;;  %v1644_v30 = vmul.f32 %v2471_v9, %v1581_v42  ;;  %v2479_v42 = vld [vmem:[#allocation2 + $0xb8] sm:$0xff]  ;;  %v2481_v56 = vld [vmem:[#allocation2 + $0x80] sm:$0xff]  ;;  %v2485_v35 = vld [vmem:[#allocation2 + $0x88] sm:$0xff] }
 0x301   : > { %v2484_v17 = vld [vmem:[#allocation2 + $0xd8] sm:$0xff] }
 0x302   : > { %v1586_v20 = vpop.permute.xlu1 %1585 }
 0x303   : > { %v1645_v0 = vmul.f32 %v2467_v61, %v1586_v20  ;;  %v1646_v43 = vmul.f32 %v2468_v19, %v1586_v20  ;;  %v1647_v54 = vmul.f32 %v2469_v12, %v1586_v20  ;;  %v1648_v6 = vmul.f32 %v2470_v11, %v1586_v20  ;;  %v2486_v61 = vld [vmem:[#allocation2 + $0x90] sm:$0xff]  ;;  %v2487_v19 = vld [vmem:[#allocation2 + $0x98] sm:$0xff]  ;;  %v2488_v12 = vld [vmem:[#allocation2 + $0xa0] sm:$0xff] }
 0x304   : > { %v1649_v18 = vmul.f32 %v2472_v33, %v1586_v20  ;;  %v1650_v63 = vmul.f32 %v2473_v22, %v1586_v20  ;;  %v1651_v15 = vmul.f32 %v2474_v58, %v1586_v20 }
 0x306   : > { %v1730_v38 = vpop.permute.xlu0 %1729  ;;  %v1725_v7 = vpop.permute.xlu1 %1724 }
 0x307   : > { %v1789_v32 = vadd.f32 %v1730_v38, %v1645_v0  ;;  %v1790_v44 = vadd.f32 %v1730_v38, %v1646_v43  ;;  %v1791_v47 = vadd.f32 %v1730_v38, %v1647_v54  ;;  %v1792_v5 = vadd.f32 %v1730_v38, %v1648_v6 }
 0x308   : > { %v1793_v14 = vadd.f32 %v1730_v38, %v1649_v18  ;;  %v1794_v40 = vadd.f32 %v1730_v38, %v1650_v63  ;;  %v1795_v1 = vadd.f32 %v1730_v38, %v1651_v15  ;;  %v1782_v46 = vadd.f32 %v1725_v7, %v1638_v31 }
 0x309   : > { %v2348_v36 = vpack.c.bf16 %v1790_v44, %v1789_v32  ;;  %v2349_v62 = vpack.c.bf16 %v1792_v5, %v1791_v47  ;;  %v1783_v4 = vadd.f32 %v1725_v7, %v1639_v3  ;;  %v1784_v50 = vadd.f32 %v1725_v7, %v1640_v2 }
 0x30a   : > { %v2350_v48 = vpack.c.bf16 %v1794_v40, %v1793_v14  ;;  %v2351_v60 = vpack.c.bf16 %v1795_v1, %v1795_v1  ;;  %v1785_v34 = vadd.f32 %v1725_v7, %v1641_v49  ;;  %v1786_v10 = vadd.f32 %v1725_v7, %v1642_v41  ;;  %v1591_v28 = vpop.permute.xlu1 %1590 }
 0x30b   : > { %2135 = vst [vmem:[%s3747_s25 + $0x1c] sm:$0xff] %v2348_v36  ;;  %2136 = vst [vmem:[%s3747_s25 + $0x24] sm:$0xff] %v2349_v62  ;;  %v1787_v59 = vadd.f32 %v1725_v7, %v1643_v24  ;;  %v1788_v21 = vadd.f32 %v1725_v7, %v1644_v30  ;;  %v2344_v13 = vpack.c.bf16 %v1783_v4, %v1782_v46 }
 0x30c   : > { %2137 = vst [vmem:[%s3747_s25 + $0x2c] sm:$0xff] %v2350_v48  ;;  %2138 = vst.msk [vmem:[%s3747_s25 + $0x34] sm:$0xf] %vm2133_vm2, %v2351_v60  ;;  %v2345_v27 = vpack.c.bf16 %v1785_v34, %v1784_v50  ;;  %v1652_v23 = vmul.f32 %v2475_v37, %v1591_v28  ;;  %v1653_v52 = vmul.f32 %v2476_v26, %v1591_v28  ;;  %v2489_v60 = vld [vmem:[#allocation2 + $0xe0] sm:$0xff] }
 0x30d   : > { %v2346_v16 = vpack.c.bf16 %v1787_v59, %v1786_v10  ;;  %v2347_v51 = vpack.c.bf16 %v1788_v21, %v1788_v21  ;;  %2130 = vst [vmem:[%s3747_s25] sm:$0xff] %v2344_v13  ;;  %v1654_v3 = vmul.f32 %v2481_v56, %v1591_v28  ;;  %v1655_v24 = vmul.f32 %v2485_v35, %v1591_v28  ;;  %v2490_v10 = vld [vmem:[#allocation2 + $0xe8] sm:$0xff]  ;;  %v2491_v59 = vld [vmem:[#allocation2 + $0xf0] sm:$0xff]  ;;  %v2492_v13 = vld [vmem:[#allocation2 + $0xf8] sm:$0xff] }
 0x30e   : > { %2131 = vst [vmem:[%s3747_s25 + $0x8] sm:$0xff] %v2345_v27  ;;  %v1596_v53 = vpop.permute.xlu1 %1595  ;;  %v1656_v0 = vmul.f32 %v2486_v61, %v1591_v28  ;;  %v1657_v43 = vmul.f32 %v2487_v19, %v1591_v28  ;;  %v1658_v54 = vmul.f32 %v2488_v12, %v1591_v28 }
 0x30f   : > { %2132 = vst [vmem:[%s3747_s25 + $0x10] sm:$0xff] %v2346_v16  ;;  %2134 = vst.msk [vmem:[%s3747_s25 + $0x18] sm:$0xf] %vm2133_vm2, %v2347_v51  ;;  %v1659_v45 = vmul.f32 %v2477_v25, %v1596_v53  ;;  %v1660_v39 = vmul.f32 %v2478_v8, %v1596_v53  ;;  %v1661_v20 = vmul.f32 %v2479_v42, %v1596_v53  ;;  %v2493_v16 = vld [vmem:[#allocation2 + $0x100] sm:$0xff]  ;;  %v2496_v25 = vld [vmem:[#allocation2 + $0x128] sm:$0xff] }
 0x310   : > { %v1662_v31 = vmul.f32 %v2480_v29, %v1596_v53  ;;  %v1663_v2 = vmul.f32 %v2482_v55, %v1596_v53  ;;  %v1664_v49 = vmul.f32 %v2483_v57, %v1596_v53  ;;  %v1665_v41 = vmul.f32 %v2484_v17, %v1596_v53  ;;  %v2497_v8 = vld [vmem:[#allocation2 + $0x130] sm:$0xff] }
 0x311   : > { %v1740_v11 = vpop.permute.xlu0 %1739 }
 0x312   : > { %v1803_v6 = vadd.f32 %v1740_v11, %v1659_v45  ;;  %v1804_v9 = vadd.f32 %v1740_v11, %v1660_v39  ;;  %v1805_v30 = vadd.f32 %v1740_v11, %v1661_v20  ;;  %v1806_v33 = vadd.f32 %v1740_v11, %v1662_v31  ;;  %v1735_v18 = vpop.permute.xlu1 %1734  ;;  %v2498_v20 = vld [vmem:[#allocation2 + $0x108] sm:$0xff]  ;;  %v2499_v31 = vld [vmem:[#allocation2 + $0x138] sm:$0xff] }
 0x313   : > { %v1807_v22 = vadd.f32 %v1740_v11, %v1663_v2  ;;  %v1808_v63 = vadd.f32 %v1740_v11, %v1664_v49  ;;  %v1809_v58 = vadd.f32 %v1740_v11, %v1665_v41  ;;  %v1796_v15 = vadd.f32 %v1735_v18, %v1652_v23  ;;  %v2494_v23 = vld [vmem:[#allocation2 + $0x118] sm:$0xff]  ;;  %v2501_v2 = vld [vmem:[#allocation2 + $0x148] sm:$0xff] }
 0x314   : > { %v2356_v38 = vpack.c.bf16 %v1804_v9, %v1803_v6  ;;  %v2357_v7 = vpack.c.bf16 %v1806_v33, %v1805_v30  ;;  %v1797_v32 = vadd.f32 %v1735_v18, %v1653_v52  ;;  %v1798_v44 = vadd.f32 %v1735_v18, %v1654_v3  ;;  %v2495_v52 = vld [vmem:[#allocation2 + $0x120] sm:$0xff] }
 0x315   : > { %v2358_v47 = vpack.c.bf16 %v1808_v63, %v1807_v22  ;;  %v2359_v5 = vpack.c.bf16 %v1809_v58, %v1809_v58  ;;  %v1799_v14 = vadd.f32 %v1735_v18, %v1655_v24  ;;  %v1800_v40 = vadd.f32 %v1735_v18, %v1656_v0  ;;  %v2500_v3 = vld [vmem:[#allocation2 + $0x140] sm:$0xff]  ;;  %v2502_v24 = vld [vmem:[#allocation2 + $0x110] sm:$0xff] }
 0x316   : > { %2143 = vst [vmem:[%s3747_s25 + $0x54] sm:$0xff] %v2356_v38  ;;  %2144 = vst [vmem:[%s3747_s25 + $0x5c] sm:$0xff] %v2357_v7  ;;  %v1801_v1 = vadd.f32 %v1735_v18, %v1657_v43  ;;  %v1802_v46 = vadd.f32 %v1735_v18, %v1658_v54  ;;  %v2352_v36 = vpack.c.bf16 %v1797_v32, %v1796_v15  ;;  %v1601_v62 = vpop.permute.xlu1 %1600 }
 0x317   : > { %2145 = vst [vmem:[%s3747_s25 + $0x64] sm:$0xff] %v2358_v47  ;;  %2146 = vst.msk [vmem:[%s3747_s25 + $0x6c] sm:$0xf] %vm2133_vm2, %v2359_v5  ;;  %v2353_v4 = vpack.c.bf16 %v1799_v14, %v1798_v44  ;;  %v1666_v34 = vmul.f32 %v2489_v60, %v1601_v62  ;;  %v1667_v28 = vmul.f32 %v2490_v10, %v1601_v62  ;;  %v2503_v5 = vld [vmem:[#allocation2 + $0x150] sm:$0xff]  ;;  %v2508_v10 = vld [vmem:[#allocation2 + $0x188] sm:$0xff] }
 0x318   : > { %v2354_v50 = vpack.c.bf16 %v1801_v1, %v1800_v40  ;;  %v2355_v48 = vpack.c.bf16 %v1802_v46, %v1802_v46  ;;  %2139 = vst [vmem:[%s3747_s25 + $0x38] sm:$0xff] %v2352_v36  ;;  %v1668_v21 = vmul.f32 %v2491_v59, %v1601_v62  ;;  %v1669_v27 = vmul.f32 %v2492_v13, %v1601_v62  ;;  %v2504_v40 = vld [vmem:[#allocation2 + $0x158] sm:$0xff]  ;;  %v2505_v46 = vld [vmem:[#allocation2 + $0x160] sm:$0xff]  ;;  %v2509_v59 = vld [vmem:[#allocation2 + $0x190] sm:$0xff] }
 0x319   : > { %2140 = vst [vmem:[%s3747_s25 + $0x40] sm:$0xff] %v2353_v4  ;;  %v1670_v51 = vmul.f32 %v2493_v16, %v1601_v62  ;;  %v1671_v29 = vmul.f32 %v2498_v20, %v1601_v62  ;;  %v1672_v61 = vmul.f32 %v2502_v24, %v1601_v62  ;;  %v2506_v62 = vld [vmem:[#allocation2 + $0x168] sm:$0xff]  ;;  %v2510_v13 = vld [vmem:[#allocation2 + $0x198] sm:$0xff]  ;;  %v2511_v16 = vld [vmem:[#allocation2 + $0x1a0] sm:$0xff] }
 0x31a   : > { %2141 = vst [vmem:[%s3747_s25 + $0x48] sm:$0xff] %v2354_v50  ;;  %2142 = vst.msk [vmem:[%s3747_s25 + $0x50] sm:$0xf] %vm2133_vm2, %v2355_v48  ;;  %v1606_v37 = vpop.permute.xlu1 %1605  ;;  %v2507_v50 = vld [vmem:[#allocation2 + $0x170] sm:$0xff] }
 0x31b   : > { %v1673_v26 = vmul.f32 %v2494_v23, %v1606_v37  ;;  %v1674_v53 = vmul.f32 %v2495_v52, %v1606_v37  ;;  %v1675_v45 = vmul.f32 %v2496_v25, %v1606_v37  ;;  %v1676_v39 = vmul.f32 %v2497_v8, %v1606_v37 }
 0x31c   : > { %v1750_v42 = vpop.permute.xlu0 %1749  ;;  %v1677_v56 = vmul.f32 %v2499_v31, %v1606_v37  ;;  %v1678_v55 = vmul.f32 %v2500_v3, %v1606_v37  ;;  %v1679_v57 = vmul.f32 %v2501_v2, %v1606_v37  ;;  %v2512_v37 = vld [vmem:[#allocation2 + $0x178] sm:$0xff]  ;;  %v2516_v31 = vld [vmem:[#allocation2 + $0x180] sm:$0xff] }
 0x31d   : > { %v1817_v49 = vadd.f32 %v1750_v42, %v1673_v26  ;;  %v1818_v17 = vadd.f32 %v1750_v42, %v1674_v53  ;;  %v1819_v41 = vadd.f32 %v1750_v42, %v1675_v45  ;;  %v1820_v35 = vadd.f32 %v1750_v42, %v1676_v39  ;;  %v2513_v26 = vld [vmem:[#allocation2 + $0x1a8] sm:$0xff]  ;;  %v2514_v53 = vld [vmem:[#allocation2 + $0x1b0] sm:$0xff]  ;;  %v2515_v45 = vld [vmem:[#allocation2 + $0x1b8] sm:$0xff] }
 0x31e   : > { %v1821_v0 = vadd.f32 %v1750_v42, %v1677_v56  ;;  %v1822_v19 = vadd.f32 %v1750_v42, %v1678_v55  ;;  %v1823_v43 = vadd.f32 %v1750_v42, %v1679_v57  ;;  %v1745_v12 = vpop.permute.xlu1 %1744 }
 0x31f   : > { %v2364_v54 = vpack.c.bf16 %v1818_v17, %v1817_v49  ;;  %v2365_v11 = vpack.c.bf16 %v1820_v35, %v1819_v41  ;;  %v1810_v6 = vadd.f32 %v1745_v12, %v1666_v34  ;;  %v1811_v9 = vadd.f32 %v1745_v12, %v1667_v28 }
 0x320   : > { %v2366_v30 = vpack.c.bf16 %v1822_v19, %v1821_v0  ;;  %v2367_v33 = vpack.c.bf16 %v1823_v43, %v1823_v43  ;;  %v1812_v18 = vadd.f32 %v1745_v12, %v1668_v21  ;;  %v1813_v22 = vadd.f32 %v1745_v12, %v1669_v27 }
 0x321   : > { %2151 = vst [vmem:[%s3747_s25 + $0x8c] sm:$0xff] %v2364_v54  ;;  %2152 = vst [vmem:[%s3747_s25 + $0x94] sm:$0xff] %v2365_v11  ;;  %v1814_v63 = vadd.f32 %v1745_v12, %v1670_v51  ;;  %v1815_v58 = vadd.f32 %v1745_v12, %v1671_v29  ;;  %v1816_v15 = vadd.f32 %v1745_v12, %v1672_v61 }
 0x322   : > { %v2360_v38 = vpack.c.bf16 %v1811_v9, %v1810_v6  ;;  %2153 = vst [vmem:[%s3747_s25 + $0x9c] sm:$0xff] %v2366_v30  ;;  %2154 = vst.msk [vmem:[%s3747_s25 + $0xa4] sm:$0xf] %vm2133_vm2, %v2367_v33  ;;  %v2361_v7 = vpack.c.bf16 %v1813_v22, %v1812_v18  ;;  %v1611_v32 = vpop.permute.xlu1 %1610  ;;  %v2517_v9 = vld [vmem:[#allocation2 + $0x1f8] sm:$0xff]  ;;  %v2518_v33 = vld [vmem:[#allocation2 + $0x200] sm:$0xff] }
 0x323   : > { %v2362_v44 = vpack.c.bf16 %v1815_v58, %v1814_v63  ;;  %v2363_v47 = vpack.c.bf16 %v1816_v15, %v1816_v15  ;;  %v1680_v14 = vmul.f32 %v2503_v5, %v1611_v32  ;;  %v1681_v1 = vmul.f32 %v2504_v40, %v1611_v32  ;;  %v2519_v22 = vld [vmem:[#allocation2 + $0x208] sm:$0xff]  ;;  %v2520_v58 = vld [vmem:[#allocation2 + $0x210] sm:$0xff] }
 0x324   : > { %2147 = vst [vmem:[%s3747_s25 + $0x70] sm:$0xff] %v2360_v38  ;;  %2148 = vst [vmem:[%s3747_s25 + $0x78] sm:$0xff] %v2361_v7  ;;  %v1682_v36 = vmul.f32 %v2505_v46, %v1611_v32  ;;  %v1683_v4 = vmul.f32 %v2506_v62, %v1611_v32  ;;  %v1684_v48 = vmul.f32 %v2507_v50, %v1611_v32  ;;  %v2521_v7 = vld [vmem:[#allocation2 + $0x218] sm:$0xff]  ;;  %v2523_v5 = vld [vmem:[#allocation2 + $0x228] sm:$0xff] }
 0x325   : > { %2149 = vst [vmem:[%s3747_s25 + $0x80] sm:$0xff] %v2362_v44  ;;  %2150 = vst.msk [vmem:[%s3747_s25 + $0x88] sm:$0xf] %vm2133_vm2, %v2363_v47  ;;  %v1685_v23 = vmul.f32 %v2512_v37, %v1611_v32  ;;  %v1686_v56 = vmul.f32 %v2516_v31, %v1611_v32  ;;  %v2522_v44 = vld [vmem:[#allocation2 + $0x220] sm:$0xff] }
 0x326   : > { %v1616_v60 = vpop.permute.xlu1 %1615 }
 0x327   : > { %v1760_v34 = vpop.permute.xlu0 %1759  ;;  %v1687_v28 = vmul.f32 %v2508_v10, %v1616_v60  ;;  %v1688_v21 = vmul.f32 %v2509_v59, %v1616_v60  ;;  %v1689_v27 = vmul.f32 %v2510_v13, %v1616_v60  ;;  %v1690_v51 = vmul.f32 %v2511_v16, %v1616_v60  ;;  %v2527_v10 = vld [vmem:[#allocation2 + $0x1d8] sm:$0xff]  ;;  %v2528_v59 = vld [vmem:[#allocation2 + $0x1e0] sm:$0xff]  ;;  %v2529_v13 = vld [vmem:[#allocation2 + $0x1e8] sm:$0xff] }
 0x328   : > { %v1691_v52 = vmul.f32 %v2513_v26, %v1616_v60  ;;  %v1692_v25 = vmul.f32 %v2514_v53, %v1616_v60  ;;  %v1693_v8 = vmul.f32 %v2515_v45, %v1616_v60  ;;  %v2526_v60 = vld [vmem:[#allocation2 + $0x1d0] sm:$0xff] }
 0x329   : > { %v1831_v39 = vadd.f32 %v1760_v34, %v1687_v28  ;;  %v1832_v42 = vadd.f32 %v1760_v34, %v1688_v21  ;;  %v1833_v20 = vadd.f32 %v1760_v34, %v1689_v27  ;;  %v1834_v29 = vadd.f32 %v1760_v34, %v1690_v51  ;;  %v2530_v45 = vld [vmem:[#allocation2 + $0x1f0] sm:$0xff] }
 0x32a   : > { %v1835_v3 = vadd.f32 %v1760_v34, %v1691_v52  ;;  %v1836_v55 = vadd.f32 %v1760_v34, %v1692_v25  ;;  %v1837_v2 = vadd.f32 %v1760_v34, %v1693_v8  ;;  %v1755_v57 = vpop.permute.xlu1 %1754 }
 0x32b   : > { %v2372_v49 = vpack.c.bf16 %v1832_v42, %v1831_v39  ;;  %v2373_v17 = vpack.c.bf16 %v1834_v29, %v1833_v20  ;;  %v1824_v41 = vadd.f32 %v1755_v57, %v1680_v14  ;;  %v1825_v35 = vadd.f32 %v1755_v57, %v1681_v1 }
 0x32c   : > { %v2374_v24 = vpack.c.bf16 %v1836_v55, %v1835_v3  ;;  %v2375_v61 = vpack.c.bf16 %v1837_v2, %v1837_v2  ;;  %v1826_v0 = vadd.f32 %v1755_v57, %v1682_v36  ;;  %v1827_v19 = vadd.f32 %v1755_v57, %v1683_v4  ;;  %v2524_v36 = vld [vmem:[#allocation2 + $0x1c0] sm:$0xff]  ;;  %v2525_v4 = vld [vmem:[#allocation2 + $0x1c8] sm:$0xff] }
 0x32d   : > { %v1626_v43 = vpop.permute.xlu0 %1625  ;;  %2159 = vst [vmem:[%s3747_s25 + $0xc4] sm:$0xff] %v2372_v49  ;;  %2160 = vst [vmem:[%s3747_s25 + $0xcc] sm:$0xff] %v2373_v17  ;;  %v1828_v12 = vadd.f32 %v1755_v57, %v1684_v48  ;;  %v1829_v54 = vadd.f32 %v1755_v57, %v1685_v23  ;;  %v1830_v11 = vadd.f32 %v1755_v57, %v1686_v56 }
 0x32e   : > { %v2368_v6 = vpack.c.bf16 %v1825_v35, %v1824_v41  ;;  %v1701_v30 = vmul.f32 %v2517_v9, %v1626_v43  ;;  %v1702_v18 = vmul.f32 %v2518_v33, %v1626_v43  ;;  %v1703_v63 = vmul.f32 %v2519_v22, %v1626_v43  ;;  %2161 = vst [vmem:[%s3747_s25 + $0xd4] sm:$0xff] %v2374_v24  ;;  %v1621_v38 = vpop.permute.xlu1 %1620  ;;  %v2531_v24 = vld [vmem:[#allocation2 + $0x230] sm:$0xff]  ;;  %v2534_v9 = vld [vmem:[#allocation2 + $0x248] sm:$0xff] }
 0x32f   : > { %v1704_v15 = vmul.f32 %v2520_v58, %v1626_v43  ;;  %2162 = vst.msk [vmem:[%s3747_s25 + $0xdc] sm:$0xf] %vm2133_vm2, %v2375_v61  ;;  %v1705_v32 = vmul.f32 %v2521_v7, %v1626_v43  ;;  %v1706_v47 = vmul.f32 %v2522_v44, %v1626_v43  ;;  %v1707_v14 = vmul.f32 %v2523_v5, %v1626_v43  ;;  %v2535_v33 = vld [vmem:[#allocation2 + $0x268] sm:$0xff]  ;;  %v2536_v22 = vld [vmem:[#allocation2 + $0x270] sm:$0xff]  ;;  %v2537_v58 = vld [vmem:[#allocation2 + $0x278] sm:$0xff] }
 0x330   : > { %v2369_v40 = vpack.c.bf16 %v1827_v19, %v1826_v0  ;;  %2155 = vst [vmem:[%s3747_s25 + $0xa8] sm:$0xff] %v2368_v6  ;;  %v2370_v1 = vpack.c.bf16 %v1829_v54, %v1828_v12  ;;  %v2371_v46 = vpack.c.bf16 %v1830_v11, %v1830_v11  ;;  %v1694_v62 = vmul.f32 %v2524_v36, %v1621_v38  ;;  %v2532_v0 = vld [vmem:[#allocation2 + $0x238] sm:$0xff]  ;;  %v2533_v11 = vld [vmem:[#allocation2 + $0x240] sm:$0xff] }
 0x331   : > { %v1695_v50 = vmul.f32 %v2525_v4, %v1621_v38  ;;  %v1770_v48 = vpop.permute.xlu0 %1769  ;;  %v1696_v34 = vmul.f32 %v2526_v60, %v1621_v38  ;;  %v1697_v28 = vmul.f32 %v2527_v10, %v1621_v38  ;;  %v1698_v21 = vmul.f32 %v2528_v59, %v1621_v38  ;;  %v2544_v10 = vld [vmem:[#allocation2 + $0x260] sm:$0xff] }
 0x332   : > { %2156 = vst [vmem:[%s3747_s25 + $0xb0] sm:$0xff] %v2369_v40  ;;  %v1699_v27 = vmul.f32 %v2529_v13, %v1621_v38  ;;  %v1845_v16 = vadd.f32 %v1770_v48, %v1701_v30  ;;  %v1846_v51 = vadd.f32 %v1770_v48, %v1702_v18  ;;  %v1847_v37 = vadd.f32 %v1770_v48, %v1703_v63  ;;  %v1765_v26 = vpop.permute.xlu1 %1764 }
 0x333   : > { %v1848_v23 = vadd.f32 %v1770_v48, %v1704_v15  ;;  %2157 = vst [vmem:[%s3747_s25 + $0xb8] sm:$0xff] %v2370_v1  ;;  %2158 = vst.msk [vmem:[%s3747_s25 + $0xc0] sm:$0xf] %vm2133_vm2, %v2371_v46  ;;  %v1849_v52 = vadd.f32 %v1770_v48, %v1705_v32  ;;  %v1850_v53 = vadd.f32 %v1770_v48, %v1706_v47  ;;  %v2539_v32 = vld [vmem:[#allocation2 + $0x280] sm:$0xff]  ;;  %v2540_v47 = vld [vmem:[#allocation2 + $0x288] sm:$0xff] }
 0x334   : > { %v1851_v25 = vadd.f32 %v1770_v48, %v1707_v14  ;;  %v1700_v8 = vmul.f32 %v2530_v45, %v1621_v38  ;;  %v2380_v39 = vpack.c.bf16 %v1846_v51, %v1845_v16  ;;  %v1838_v20 = vadd.f32 %v1765_v26, %v1694_v62  ;;  %v2538_v38 = vld [vmem:[#allocation2 + $0x250] sm:$0xff]  ;;  %v2542_v1 = vld [vmem:[#allocation2 + $0x258] sm:$0xff] }
 0x335   : > { %v2381_v42 = vpack.c.bf16 %v1848_v23, %v1847_v37  ;;  %v1839_v29 = vadd.f32 %v1765_v26, %v1695_v50  ;;  %v2382_v31 = vpack.c.bf16 %v1850_v53, %v1849_v52  ;;  %v1840_v3 = vadd.f32 %v1765_v26, %v1696_v34  ;;  %v2541_v14 = vld [vmem:[#allocation2 + $0x290] sm:$0xff]  ;;  %v2543_v62 = vld [vmem:[#allocation2 + $0x298] sm:$0xff] }
 0x336   : > { %v2383_v56 = vpack.c.bf16 %v1851_v25, %v1851_v25  ;;  %v1841_v55 = vadd.f32 %v1765_v26, %v1697_v28  ;;  %2167 = vst [vmem:[%s3747_s25 + $0xfc] sm:$0xff] %v2380_v39  ;;  %v1842_v2 = vadd.f32 %v1765_v26, %v1698_v21  ;;  %v1843_v57 = vadd.f32 %v1765_v26, %v1699_v27  ;;  %v1631_v41 = vpop.permute.xlu1 %1630 }
 0x337   : > { %2168 = vst [vmem:[%s3747_s25 + $0x104] sm:$0xff] %v2381_v42  ;;  %v1844_v49 = vadd.f32 %v1765_v26, %v1700_v8  ;;  %v2376_v17 = vpack.c.bf16 %v1839_v29, %v1838_v20  ;;  %2169 = vst [vmem:[%s3747_s25 + $0x10c] sm:$0xff] %v2382_v31  ;;  %v1708_v61 = vmul.f32 %v2531_v24, %v1631_v41 }
 0x338   : > { %2170 = vst.msk [vmem:[%s3747_s25 + $0x114] sm:$0xf] %vm2133_vm2, %v2383_v56  ;;  %v2377_v35 = vpack.c.bf16 %v1841_v55, %v1840_v3  ;;  %v1709_v19 = vmul.f32 %v2532_v0, %v1631_v41  ;;  %v1636_v43 = vpop.permute.xlu0 %1635  ;;  %v2378_v12 = vpack.c.bf16 %v1843_v57, %v1842_v2  ;;  %v1710_v6 = vmul.f32 %v2533_v11, %v1631_v41 }
 0x339   : > { %v2379_v54 = vpack.c.bf16 %v1844_v49, %v1844_v49  ;;  %2163 = vst [vmem:[%s3747_s25 + $0xe0] sm:$0xff] %v2376_v17  ;;  %v1711_v30 = vmul.f32 %v2534_v9, %v1631_v41  ;;  %v1715_v18 = vmul.f32 %v2535_v33, %v1636_v43  ;;  %v1716_v63 = vmul.f32 %v2536_v22, %v1636_v43 }
 0x33a   : > { %v1717_v15 = vmul.f32 %v2537_v58, %v1636_v43  ;;  %2164 = vst [vmem:[%s3747_s25 + $0xe8] sm:$0xff] %v2377_v35  ;;  %v1712_v7 = vmul.f32 %v2538_v38, %v1631_v41  ;;  %v1718_v44 = vmul.f32 %v2539_v32, %v1636_v43  ;;  %v1719_v5 = vmul.f32 %v2540_v47, %v1636_v43  ;;  %v1775_v36 = vpop.permute.xlu1 %1774 }
 0x33b   : > { %v1720_v40 = vmul.f32 %v2541_v14, %v1636_v43  ;;  %2165 = vst [vmem:[%s3747_s25 + $0xf0] sm:$0xff] %v2378_v12  ;;  %2166 = vst.msk [vmem:[%s3747_s25 + $0xf8] sm:$0xf] %vm2133_vm2, %v2379_v54  ;;  %v1713_v46 = vmul.f32 %v2542_v1, %v1631_v41  ;;  %v1721_v4 = vmul.f32 %v2543_v62, %v1636_v43 }
 0x33c   : > { %v1852_v50 = vadd.f32 %v1775_v36, %v1708_v61  ;;  %v1853_v48 = vadd.f32 %v1775_v36, %v1709_v19  ;;  %v1854_v60 = vadd.f32 %v1775_v36, %v1710_v6  ;;  %v1780_v34 = vpop.permute.xlu0 %1779  ;;  %v1714_v28 = vmul.f32 %v2544_v10, %v1631_v41 }
 0x33d   : > { %v1855_v59 = vadd.f32 %v1775_v36, %v1711_v30  ;;  %v1856_v21 = vadd.f32 %v1775_v36, %v1712_v7  ;;  %v1857_v13 = vadd.f32 %v1775_v36, %v1713_v46  ;;  %v1859_v27 = vadd.f32 %v1780_v34, %v1715_v18 }
 0x33e   : > { %v1860_v16 = vadd.f32 %v1780_v34, %v1716_v63  ;;  %v1861_v51 = vadd.f32 %v1780_v34, %v1717_v15  ;;  %v1862_v37 = vadd.f32 %v1780_v34, %v1718_v44  ;;  %v1863_v23 = vadd.f32 %v1780_v34, %v1719_v5 }
 0x33f   : > { %v1864_v26 = vadd.f32 %v1780_v34, %v1720_v40  ;;  %v1865_v52 = vadd.f32 %v1780_v34, %v1721_v4  ;;  %v1858_v53 = vadd.f32 %v1775_v36, %v1714_v28  ;;  %v2384_v8 = vpack.c.bf16 %v1853_v48, %v1852_v50 }
 0x340   : > { %v2388_v25 = vpack.c.bf16 %v1860_v16, %v1859_v27  ;;  %v2389_v45 = vpack.c.bf16 %v1862_v37, %v1861_v51  ;;  %v2385_v39 = vpack.c.bf16 %v1855_v59, %v1854_v60  ;;  %v2386_v29 = vpack.c.bf16 %v1857_v13, %v1856_v21 }
 0x341   : > { %v2390_v42 = vpack.c.bf16 %v1864_v26, %v1863_v23  ;;  %v2391_v20 = vpack.c.bf16 %v1865_v52, %v1865_v52  ;;  %v2387_v31 = vpack.c.bf16 %v1858_v53, %v1858_v53  ;;  %2171 = vst [vmem:[%s3747_s25 + $0x118] sm:$0xff] %v2384_v8 }
 0x342   : > { %2175 = vst [vmem:[%s3747_s25 + $0x134] sm:$0xff] %v2388_v25  ;;  %2176 = vst [vmem:[%s3747_s25 + $0x13c] sm:$0xff] %v2389_v45 }
 0x343   : > { %2172 = vst [vmem:[%s3747_s25 + $0x120] sm:$0xff] %v2385_v39  ;;  %2177 = vst [vmem:[%s3747_s25 + $0x144] sm:$0xff] %v2390_v42 }
 0x344   : > { %2178 = vst.msk [vmem:[%s3747_s25 + $0x14c] sm:$0xf] %vm2133_vm2, %v2391_v20  ;;  %2173 = vst [vmem:[%s3747_s25 + $0x128] sm:$0xff] %v2386_v29 }
 0x345   : > { %2174 = vst.msk [vmem:[%s3747_s25 + $0x130] sm:$0xf] %vm2133_vm2, %v2387_v31 }
 0x346 PF: > { %s15_s18 = sadd.s32 1, %s2551_s18  }
 0x347   : > { %p12_p4 = scmp.ge.s32.totalorder %s15_s18, 7  }
 0x349   :  { %14 = sbr.rel (!%p12_p4) target bundleno = 1 (0x1), region = 76 }

</bundles_post_ra>
